<compile_context>
chip_gen: v5e
topology: v5e:2x2
jax: 0.10.0
libtpu: 0.0.40
codegen_flags: <defaults>
</compile_context>

<pallas_src>
import jax
import jax.numpy as jnp
from jax import lax
from jax.experimental import pallas as pl
from jax.experimental.pallas import tpu as pltpu

# ---- small, module-consistent hyperparameters ----
N_EMBD = 32
N_HEAD = 4
N_LAYERS = 2
VOCAB = 128
MAX_SEQ_LEN = 8                      # KV-cache buffer length appended after prefill
HEAD_DIM = N_EMBD // N_HEAD
LN_EPS = 1e-5
CACHE_LANES = 2 * N_LAYERS * N_EMBD  # = 128 : [k_l0 | k_l1 | v_l0 | v_l1] merged-head cols


def _full_spec(shape):
    """Full-array block that never changes across the grid (stays resident in VMEM)."""
    nd = len(shape)
    return pl.BlockSpec(shape, lambda b: (0,) * nd)


def _layernorm(x, g, b):
    # One-pass variance: mean(x^2) - mean(x)^2 (one cross-lane reduction pair, not two).
    mean = jnp.mean(x, axis=-1, keepdims=True)
    var = jnp.mean(x * x, axis=-1, keepdims=True) - mean * mean
    return (x - mean) * lax.rsqrt(var + LN_EPS) * g + b


def _bf16(x):
    return x.astype(jnp.bfloat16)


# ---------------------------- fully fused GPT-Neo forward kernel ----------------------------

def _gptneo_kernel(x_ref,
                   ln1_g_ref, ln1_b_ref, wqkv_ref, wout_ref, bout_ref,
                   ln2_g_ref, ln2_b_ref, wfc_ref, bfc_ref, wproj_ref, bproj_ref,
                   lnf_g_ref, lnf_b_ref, lm_w_ref,
                   logits_ref, cache_ref):
    E, H, Dh, L = N_EMBD, N_HEAD, HEAD_DIM, N_LAYERS
    T = x_ref.shape[1]                       # one batch element per grid step

    x = x_ref[0]                             # (T, E) f32; stays in vregs across all layers

    # causal mask, shared across layers and heads
    row = lax.broadcasted_iota(jnp.int32, (T, T), 0)
    col = lax.broadcasted_iota(jnp.int32, (T, T), 1)
    allow = col <= row

    k_cols, v_cols = [], []                  # per-layer merged-head K/V, kept in registers

    for l in range(L):                       # static unroll; weights are VMEM-resident
        # ---- LN1 -> fused QKV matmul (bf16 MXU inputs, f32 accumulation) ----
        h = _layernorm(x, ln1_g_ref[l], ln1_b_ref[l])
        qkv = jnp.dot(_bf16(h), wqkv_ref[l],
                      preferred_element_type=jnp.float32)            # (T, 3E) f32
        q = qkv[:, 0:E]
        k = qkv[:, E:2 * E]
        v = qkv[:, 2 * E:3 * E]
        k_cols.append(k)
        v_cols.append(v)

        # ---- causal attention; static unroll over H=4 heads, everything stays in vregs.
        #      No materialized k^T (dot_general contracts the last dims on the MXU) and
        #      no VMEM scratch (head outputs merged with one register concatenate).
        #      Tiny (8x8) matmuls kept in f32: MXU is idle here, parity is better.
        head_out = []
        for hh in range(H):
            qh = q[:, hh * Dh:(hh + 1) * Dh]                         # (T, Dh)
            kh = k[:, hh * Dh:(hh + 1) * Dh]
            vh = v[:, hh * Dh:(hh + 1) * Dh]
            s = lax.dot_general(qh, kh, (((1,), (1,)), ((), ())),
                                preferred_element_type=jnp.float32)  # (T, T), no 1/sqrt(d)
            s = jnp.where(allow, s, jnp.float32(-1e38))              # softmax math in f32
            s = s - jnp.max(s, axis=-1, keepdims=True)
            p = jnp.exp(s)
            p = p / jnp.sum(p, axis=-1, keepdims=True)               # exact division (parity)
            head_out.append(jnp.dot(p, vh, preferred_element_type=jnp.float32))
        attn = jnp.concatenate(head_out, axis=-1)                    # (T, E) merged heads

        # ---- out_proj + residual ----
        out1 = x + jnp.dot(_bf16(attn), wout_ref[l],
                           preferred_element_type=jnp.float32) + bout_ref[l]

        # ---- LN2 -> FC + exact GELU -> proj + residual ----
        h2 = _layernorm(out1, ln2_g_ref[l], ln2_b_ref[l])
        fc = jnp.dot(_bf16(h2), wfc_ref[l],
                     preferred_element_type=jnp.float32) + bfc_ref[l]
        g = 0.5 * fc * (1.0 + lax.erf(fc * jnp.float32(0.7071067811865476)))
        x = out1 + jnp.dot(_bf16(g), wproj_ref[l],
                           preferred_element_type=jnp.float32) + bproj_ref[l]

    # ---- final LN fused with lm_head (lane-dense VOCAB=128 output store) ----
    hf = _layernorm(x, lnf_g_ref[...], lnf_b_ref[...])
    logits_ref[0] = jnp.dot(_bf16(hf), lm_w_ref[...], preferred_element_type=jnp.float32)

    # ---- KV "present" caches for all layers: one unmasked 128-lane-wide store,
    #      zero time-tail built in registers (no zero-fill + overwrite). ----
    kv = jnp.concatenate(k_cols + v_cols, axis=-1)                   # (T, 2*L*E) = (T, 128)
    kv = jnp.concatenate(
        [kv, jnp.zeros((MAX_SEQ_LEN, CACHE_LANES), jnp.float32)], axis=0)
    cache_ref[0] = kv                                                # (T+MAX, 128)


# ---------------------------- wrapper ----------------------------

def gptneo_forward(params, x):
    """Prefill forward (k_cache=None, v_cache=None, n=0) — a single fused pallas_call."""
    B, T, E = x.shape
    assert E == N_EMBD
    Tc = T + MAX_SEQ_LEN

    in_specs = [
        pl.BlockSpec((1, T, E), lambda b: (b, 0, 0)),                # activations
        _full_spec((N_LAYERS, 1, E)), _full_spec((N_LAYERS, 1, E)),  # ln1 gamma/beta
        _full_spec((N_LAYERS, E, 3 * E)),                            # fused [q|k|v] (bf16)
        _full_spec((N_LAYERS, E, E)), _full_spec((N_LAYERS, 1, E)),  # out_proj w/b
        _full_spec((N_LAYERS, 1, E)), _full_spec((N_LAYERS, 1, E)),  # ln2 gamma/beta
        _full_spec((N_LAYERS, E, 4 * E)), _full_spec((N_LAYERS, 1, 4 * E)),  # fc w/b
        _full_spec((N_LAYERS, 4 * E, E)), _full_spec((N_LAYERS, 1, E)),      # proj w/b
        _full_spec((1, E)), _full_spec((1, E)),                      # final LN gamma/beta
        _full_spec((E, VOCAB)),                                      # lm_head (bf16)
    ]
    out_shape = (
        jax.ShapeDtypeStruct((B, T, VOCAB), jnp.float32),
        jax.ShapeDtypeStruct((B, Tc, CACHE_LANES), jnp.float32),
    )
    out_specs = (
        pl.BlockSpec((1, T, VOCAB), lambda b: (b, 0, 0)),
        pl.BlockSpec((1, Tc, CACHE_LANES), lambda b: (b, 0, 0)),
    )

    logits, kv = pl.pallas_call(
        _gptneo_kernel,
        grid=(B,),
        out_shape=out_shape,
        in_specs=in_specs,
        out_specs=out_specs,
        compiler_params=pltpu.CompilerParams(dimension_semantics=("parallel",)),
    )(x, params["ln1_g"], params["ln1_b"], params["qkv_w"], params["out_w"],
      params["out_b"], params["ln2_g"], params["ln2_b"], params["fc_w"],
      params["fc_b"], params["proj_w"], params["proj_b"],
      params["lnf_g"], params["lnf_b"], params["lm_w"])

    # Unpack the lane-packed caches back to the module's per-layer (B, H, T+buf, Dh)
    # layout.  Wrapper-side reshape/transpose is layout plumbing only.
    kv = kv.reshape(B, Tc, 2, N_LAYERS, N_HEAD, HEAD_DIM)
    kv = jnp.transpose(kv, (2, 3, 0, 4, 1, 5))       # (2, L, B, H, T+buf, Dh)
    k_presents = [kv[0, l] for l in range(N_LAYERS)]
    v_presents = [kv[1, l] for l in range(N_LAYERS)]
    return logits, k_presents, v_presents


# ---------------------------- params ----------------------------

def init_params(key):
    L, E = N_LAYERS, N_EMBD

    def dense(k, shape):
        # matmul weights stored in bf16: MXU-native inputs, half the weight DMA / VMEM
        return (0.02 * jax.random.normal(k, shape, jnp.float32)).astype(jnp.bfloat16)

    keys = jax.random.split(key, 5)
    return dict(
        ln1_g=jnp.ones((L, 1, E), jnp.float32),
        ln1_b=jnp.zeros((L, 1, E), jnp.float32),
        qkv_w=dense(keys[0], (L, E, 3 * E)),     # fused [q|k|v]; module q/k/v have bias=False
        out_w=dense(keys[1], (L, E, E)),
        out_b=jnp.zeros((L, 1, E), jnp.float32),
        ln2_g=jnp.ones((L, 1, E), jnp.float32),
        ln2_b=jnp.zeros((L, 1, E), jnp.float32),
        fc_w=dense(keys[2], (L, E, 4 * E)),
        fc_b=jnp.zeros((L, 1, 4 * E), jnp.float32),
        proj_w=dense(keys[3], (L, 4 * E, E)),
        proj_b=jnp.zeros((L, 1, E), jnp.float32),
        lnf_g=jnp.ones((1, E), jnp.float32),
        lnf_b=jnp.zeros((1, E), jnp.float32),
        lm_w=dense(keys[4], (E, VOCAB)),         # lm_head bias=False
    )


if __name__ == "__main__":
    key = jax.random.PRNGKey(0)
    pkey, xkey = jax.random.split(key)
    params = init_params(pkey)

    B, T = 2, 8
    x = jax.random.normal(xkey, (B, T, N_EMBD), jnp.float32)

    fwd = jax.jit(gptneo_forward)
    logits, k_presents, v_presents = fwd(params, x)
    jax.block_until_ready((logits, k_presents, v_presents))

    assert logits.shape == (B, T, VOCAB)
    assert len(k_presents) == N_LAYERS and len(v_presents) == N_LAYERS
    assert k_presents[0].shape == (B, N_HEAD, T + MAX_SEQ_LEN, HEAD_DIM)
    assert v_presents[-1].shape == (B, N_HEAD, T + MAX_SEQ_LEN, HEAD_DIM)
    print("KERNEL_OK")
</pallas_src>

<mosaic_0001>
module attributes {stable_mosaic.version = 11 : i64} {
  func.func @_gptneo_kernel(%arg0: i32, %arg1: memref<1x8x32xf32, #tpu.memory_space<vmem>>, %arg2: memref<2x1x32xf32, #tpu.memory_space<vmem>>, %arg3: memref<2x1x32xf32, #tpu.memory_space<vmem>>, %arg4: memref<2x32x96xbf16, #tpu.memory_space<vmem>>, %arg5: memref<2x32x32xbf16, #tpu.memory_space<vmem>>, %arg6: memref<2x1x32xf32, #tpu.memory_space<vmem>>, %arg7: memref<2x1x32xf32, #tpu.memory_space<vmem>>, %arg8: memref<2x1x32xf32, #tpu.memory_space<vmem>>, %arg9: memref<2x32x128xbf16, #tpu.memory_space<vmem>>, %arg10: memref<2x1x128xf32, #tpu.memory_space<vmem>>, %arg11: memref<2x128x32xbf16, #tpu.memory_space<vmem>>, %arg12: memref<2x1x32xf32, #tpu.memory_space<vmem>>, %arg13: memref<1x32xf32, #tpu.memory_space<vmem>>, %arg14: memref<1x32xf32, #tpu.memory_space<vmem>>, %arg15: memref<32x128xbf16, #tpu.memory_space<vmem>>, %arg16: memref<1x8x128xf32, #tpu.memory_space<vmem>>, %arg17: memref<1x16x128xf32, #tpu.memory_space<vmem>>) attributes {dimension_semantics = [#tpu.dimension_semantics<parallel>], iteration_bounds = array<i64: 2>, scalar_prefetch = 0 : i64, scratch_operands = 0 : i64, tpu.core_type = #tpu.core_type<tc>, window_params = [{transform_indices = @transform_0, window_bounds = array<i64: 1, 8, 32>}, {pipeline_mode = #tpu.pipeline_mode<synchronous>, transform_indices = @transform_1, window_bounds = array<i64: 2, 1, 32>}, {pipeline_mode = #tpu.pipeline_mode<synchronous>, transform_indices = @transform_2, window_bounds = array<i64: 2, 1, 32>}, {pipeline_mode = #tpu.pipeline_mode<synchronous>, transform_indices = @transform_3, window_bounds = array<i64: 2, 32, 96>}, {pipeline_mode = #tpu.pipeline_mode<synchronous>, transform_indices = @transform_4, window_bounds = array<i64: 2, 32, 32>}, {pipeline_mode = #tpu.pipeline_mode<synchronous>, transform_indices = @transform_5, window_bounds = array<i64: 2, 1, 32>}, {pipeline_mode = #tpu.pipeline_mode<synchronous>, transform_indices = @transform_6, window_bounds = array<i64: 2, 1, 32>}, {pipeline_mode = #tpu.pipeline_mode<synchronous>, transform_indices = @transform_7, window_bounds = array<i64: 2, 1, 32>}, {pipeline_mode = #tpu.pipeline_mode<synchronous>, transform_indices = @transform_8, window_bounds = array<i64: 2, 32, 128>}, {pipeline_mode = #tpu.pipeline_mode<synchronous>, transform_indices = @transform_9, window_bounds = array<i64: 2, 1, 128>}, {pipeline_mode = #tpu.pipeline_mode<synchronous>, transform_indices = @transform_10, window_bounds = array<i64: 2, 128, 32>}, {pipeline_mode = #tpu.pipeline_mode<synchronous>, transform_indices = @transform_11, window_bounds = array<i64: 2, 1, 32>}, {pipeline_mode = #tpu.pipeline_mode<synchronous>, transform_indices = @transform_12, window_bounds = array<i64: 1, 32>}, {pipeline_mode = #tpu.pipeline_mode<synchronous>, transform_indices = @transform_13, window_bounds = array<i64: 1, 32>}, {pipeline_mode = #tpu.pipeline_mode<synchronous>, transform_indices = @transform_14, window_bounds = array<i64: 32, 128>}, {transform_indices = @transform_15, window_bounds = array<i64: 1, 8, 128>}, {transform_indices = @transform_16, window_bounds = array<i64: 1, 16, 128>}]} {
    %c0 = arith.constant 0 : index
    %c0_0 = arith.constant 0 : index
    %c0_1 = arith.constant 0 : index
    %0 = vector.load %arg1[%c0, %c0_0, %c0_1] : memref<1x8x32xf32, #tpu.memory_space<vmem>>, vector<1x8x32xf32>
    %1 = vector.shape_cast %0 : vector<1x8x32xf32> to vector<8x32xf32>
    %2 = tpu.iota {dimensions = array<i32: 0>} : vector<8x8xi32>
    %3 = tpu.iota {dimensions = array<i32: 1>} : vector<8x8xi32>
    %4 = arith.cmpi sle, %3, %2 : vector<8x8xi32>
    %c0_2 = arith.constant 0 : index
    %c0_3 = arith.constant 0 : index
    %c0_4 = arith.constant 0 : index
    %5 = vector.load %arg2[%c0_2, %c0_3, %c0_4] : memref<2x1x32xf32, #tpu.memory_space<vmem>>, vector<1x1x32xf32>
    %6 = vector.shape_cast %5 : vector<1x1x32xf32> to vector<1x32xf32>
    %c0_5 = arith.constant 0 : index
    %c0_6 = arith.constant 0 : index
    %c0_7 = arith.constant 0 : index
    %7 = vector.load %arg3[%c0_5, %c0_6, %c0_7] : memref<2x1x32xf32, #tpu.memory_space<vmem>>, vector<1x1x32xf32>
    %8 = vector.shape_cast %7 : vector<1x1x32xf32> to vector<1x32xf32>
    %cst = arith.constant dense<0.000000e+00> : vector<8xf32>
    %9 = vector.multi_reduction <add>, %1, %cst [1] : vector<8x32xf32> to vector<8xf32>
    %10 = vector.shape_cast %9 : vector<8xf32> to vector<8x1xf32>
    %cst_8 = arith.constant 3.200000e+01 : f32
    %11 = vector.broadcast %cst_8 : f32 to vector<8x1xf32>
    %12 = arith.divf %10, %11 : vector<8x1xf32>
    %13 = arith.mulf %1, %1 : vector<8x32xf32>
    %cst_9 = arith.constant dense<0.000000e+00> : vector<8xf32>
    %14 = vector.multi_reduction <add>, %13, %cst_9 [1] : vector<8x32xf32> to vector<8xf32>
    %15 = vector.shape_cast %14 : vector<8xf32> to vector<8x1xf32>
    %cst_10 = arith.constant 3.200000e+01 : f32
    %16 = vector.broadcast %cst_10 : f32 to vector<8x1xf32>
    %17 = arith.divf %15, %16 : vector<8x1xf32>
    %18 = arith.mulf %12, %12 : vector<8x1xf32>
    %19 = arith.subf %17, %18 : vector<8x1xf32>
    %20 = vector.broadcast %12 : vector<8x1xf32> to vector<8x32xf32>
    %21 = arith.subf %1, %20 : vector<8x32xf32>
    %cst_11 = arith.constant 9.99999974E-6 : f32
    %22 = vector.broadcast %cst_11 : f32 to vector<8x1xf32>
    %23 = arith.addf %19, %22 : vector<8x1xf32>
    %24 = math.rsqrt %23 : vector<8x1xf32>
    %25 = vector.broadcast %24 : vector<8x1xf32> to vector<8x32xf32>
    %26 = arith.mulf %21, %25 : vector<8x32xf32>
    %27 = vector.broadcast %6 : vector<1x32xf32> to vector<8x32xf32>
    %28 = arith.mulf %26, %27 : vector<8x32xf32>
    %29 = vector.broadcast %8 : vector<1x32xf32> to vector<8x32xf32>
    %30 = arith.addf %28, %29 : vector<8x32xf32>
    %31 = arith.truncf %30 : vector<8x32xf32> to vector<8x32xbf16>
    %c0_12 = arith.constant 0 : index
    %c0_13 = arith.constant 0 : index
    %c0_14 = arith.constant 0 : index
    %32 = vector.load %arg4[%c0_12, %c0_13, %c0_14] : memref<2x32x96xbf16, #tpu.memory_space<vmem>>, vector<1x32x96xbf16>
    %33 = vector.shape_cast %32 : vector<1x32x96xbf16> to vector<32x96xbf16>
    %cst_15 = arith.constant dense<0.000000e+00> : vector<8x96xf32>
    %34 = tpu.matmul %31, %33, %cst_15 {dimension_numbers = #tpu.dot_dimension_numbers<[1], [0], [0], [1], [0, 0, 1, 1], [], []>} : vector<8x32xbf16>, vector<32x96xbf16>, vector<8x96xf32> -> vector<8x96xf32>
    %35 = vector.extract_strided_slice %34 {offsets = [0, 0], sizes = [8, 32], strides = [1, 1]} : vector<8x96xf32> to vector<8x32xf32>
    %36 = vector.extract_strided_slice %34 {offsets = [0, 32], sizes = [8, 32], strides = [1, 1]} : vector<8x96xf32> to vector<8x32xf32>
    %37 = vector.extract_strided_slice %34 {offsets = [0, 64], sizes = [8, 32], strides = [1, 1]} : vector<8x96xf32> to vector<8x32xf32>
    %38 = vector.extract_strided_slice %35 {offsets = [0, 0], sizes = [8, 8], strides = [1, 1]} : vector<8x32xf32> to vector<8x8xf32>
    %39 = vector.extract_strided_slice %36 {offsets = [0, 0], sizes = [8, 8], strides = [1, 1]} : vector<8x32xf32> to vector<8x8xf32>
    %40 = vector.extract_strided_slice %37 {offsets = [0, 0], sizes = [8, 8], strides = [1, 1]} : vector<8x32xf32> to vector<8x8xf32>
    %cst_16 = arith.constant dense<0.000000e+00> : vector<8x8xf32>
    %41 = tpu.matmul %38, %39, %cst_16 {dimension_numbers = #tpu.dot_dimension_numbers<[1], [1], [0], [0], [0, 0, 1, 0], [], []>} : vector<8x8xf32>, vector<8x8xf32>, vector<8x8xf32> -> vector<8x8xf32>
    %cst_17 = arith.constant -9.99999968E+37 : f32
    %42 = vector.broadcast %cst_17 : f32 to vector<8x8xf32>
    %43 = arith.select %4, %41, %42 : vector<8x8xi1>, vector<8x8xf32>
    %cst_18 = arith.constant dense<0xFF800000> : vector<8xf32>
    %44 = vector.multi_reduction <maximumf>, %43, %cst_18 [1] : vector<8x8xf32> to vector<8xf32>
    %45 = vector.shape_cast %44 : vector<8xf32> to vector<8x1xf32>
    %46 = vector.broadcast %45 : vector<8x1xf32> to vector<8x8xf32>
    %47 = arith.subf %43, %46 : vector<8x8xf32>
    %48 = math.exp %47 : vector<8x8xf32>
    %cst_19 = arith.constant dense<0.000000e+00> : vector<8xf32>
    %49 = vector.multi_reduction <add>, %48, %cst_19 [1] : vector<8x8xf32> to vector<8xf32>
    %50 = vector.shape_cast %49 : vector<8xf32> to vector<8x1xf32>
    %51 = vector.broadcast %50 : vector<8x1xf32> to vector<8x8xf32>
    %52 = arith.divf %48, %51 : vector<8x8xf32>
    %cst_20 = arith.constant dense<0.000000e+00> : vector<8x8xf32>
    %53 = tpu.matmul %52, %40, %cst_20 {dimension_numbers = #tpu.dot_dimension_numbers<[1], [0], [0], [1], [0, 0, 1, 1], [], []>} : vector<8x8xf32>, vector<8x8xf32>, vector<8x8xf32> -> vector<8x8xf32>
    %54 = vector.extract_strided_slice %35 {offsets = [0, 8], sizes = [8, 8], strides = [1, 1]} : vector<8x32xf32> to vector<8x8xf32>
    %55 = vector.extract_strided_slice %36 {offsets = [0, 8], sizes = [8, 8], strides = [1, 1]} : vector<8x32xf32> to vector<8x8xf32>
    %56 = vector.extract_strided_slice %37 {offsets = [0, 8], sizes = [8, 8], strides = [1, 1]} : vector<8x32xf32> to vector<8x8xf32>
    %cst_21 = arith.constant dense<0.000000e+00> : vector<8x8xf32>
    %57 = tpu.matmul %54, %55, %cst_21 {dimension_numbers = #tpu.dot_dimension_numbers<[1], [1], [0], [0], [0, 0, 1, 0], [], []>} : vector<8x8xf32>, vector<8x8xf32>, vector<8x8xf32> -> vector<8x8xf32>
    %cst_22 = arith.constant -9.99999968E+37 : f32
    %58 = vector.broadcast %cst_22 : f32 to vector<8x8xf32>
    %59 = arith.select %4, %57, %58 : vector<8x8xi1>, vector<8x8xf32>
    %cst_23 = arith.constant dense<0xFF800000> : vector<8xf32>
    %60 = vector.multi_reduction <maximumf>, %59, %cst_23 [1] : vector<8x8xf32> to vector<8xf32>
    %61 = vector.shape_cast %60 : vector<8xf32> to vector<8x1xf32>
    %62 = vector.broadcast %61 : vector<8x1xf32> to vector<8x8xf32>
    %63 = arith.subf %59, %62 : vector<8x8xf32>
    %64 = math.exp %63 : vector<8x8xf32>
    %cst_24 = arith.constant dense<0.000000e+00> : vector<8xf32>
    %65 = vector.multi_reduction <add>, %64, %cst_24 [1] : vector<8x8xf32> to vector<8xf32>
    %66 = vector.shape_cast %65 : vector<8xf32> to vector<8x1xf32>
    %67 = vector.broadcast %66 : vector<8x1xf32> to vector<8x8xf32>
    %68 = arith.divf %64, %67 : vector<8x8xf32>
    %cst_25 = arith.constant dense<0.000000e+00> : vector<8x8xf32>
    %69 = tpu.matmul %68, %56, %cst_25 {dimension_numbers = #tpu.dot_dimension_numbers<[1], [0], [0], [1], [0, 0, 1, 1], [], []>} : vector<8x8xf32>, vector<8x8xf32>, vector<8x8xf32> -> vector<8x8xf32>
    %70 = vector.extract_strided_slice %35 {offsets = [0, 16], sizes = [8, 8], strides = [1, 1]} : vector<8x32xf32> to vector<8x8xf32>
    %71 = vector.extract_strided_slice %36 {offsets = [0, 16], sizes = [8, 8], strides = [1, 1]} : vector<8x32xf32> to vector<8x8xf32>
    %72 = vector.extract_strided_slice %37 {offsets = [0, 16], sizes = [8, 8], strides = [1, 1]} : vector<8x32xf32> to vector<8x8xf32>
    %cst_26 = arith.constant dense<0.000000e+00> : vector<8x8xf32>
    %73 = tpu.matmul %70, %71, %cst_26 {dimension_numbers = #tpu.dot_dimension_numbers<[1], [1], [0], [0], [0, 0, 1, 0], [], []>} : vector<8x8xf32>, vector<8x8xf32>, vector<8x8xf32> -> vector<8x8xf32>
    %cst_27 = arith.constant -9.99999968E+37 : f32
    %74 = vector.broadcast %cst_27 : f32 to vector<8x8xf32>
    %75 = arith.select %4, %73, %74 : vector<8x8xi1>, vector<8x8xf32>
    %cst_28 = arith.constant dense<0xFF800000> : vector<8xf32>
    %76 = vector.multi_reduction <maximumf>, %75, %cst_28 [1] : vector<8x8xf32> to vector<8xf32>
    %77 = vector.shape_cast %76 : vector<8xf32> to vector<8x1xf32>
    %78 = vector.broadcast %77 : vector<8x1xf32> to vector<8x8xf32>
    %79 = arith.subf %75, %78 : vector<8x8xf32>
    %80 = math.exp %79 : vector<8x8xf32>
    %cst_29 = arith.constant dense<0.000000e+00> : vector<8xf32>
    %81 = vector.multi_reduction <add>, %80, %cst_29 [1] : vector<8x8xf32> to vector<8xf32>
    %82 = vector.shape_cast %81 : vector<8xf32> to vector<8x1xf32>
    %83 = vector.broadcast %82 : vector<8x1xf32> to vector<8x8xf32>
    %84 = arith.divf %80, %83 : vector<8x8xf32>
    %cst_30 = arith.constant dense<0.000000e+00> : vector<8x8xf32>
    %85 = tpu.matmul %84, %72, %cst_30 {dimension_numbers = #tpu.dot_dimension_numbers<[1], [0], [0], [1], [0, 0, 1, 1], [], []>} : vector<8x8xf32>, vector<8x8xf32>, vector<8x8xf32> -> vector<8x8xf32>
    %86 = vector.extract_strided_slice %35 {offsets = [0, 24], sizes = [8, 8], strides = [1, 1]} : vector<8x32xf32> to vector<8x8xf32>
    %87 = vector.extract_strided_slice %36 {offsets = [0, 24], sizes = [8, 8], strides = [1, 1]} : vector<8x32xf32> to vector<8x8xf32>
    %88 = vector.extract_strided_slice %37 {offsets = [0, 24], sizes = [8, 8], strides = [1, 1]} : vector<8x32xf32> to vector<8x8xf32>
    %cst_31 = arith.constant dense<0.000000e+00> : vector<8x8xf32>
    %89 = tpu.matmul %86, %87, %cst_31 {dimension_numbers = #tpu.dot_dimension_numbers<[1], [1], [0], [0], [0, 0, 1, 0], [], []>} : vector<8x8xf32>, vector<8x8xf32>, vector<8x8xf32> -> vector<8x8xf32>
    %cst_32 = arith.constant -9.99999968E+37 : f32
    %90 = vector.broadcast %cst_32 : f32 to vector<8x8xf32>
    %91 = arith.select %4, %89, %90 : vector<8x8xi1>, vector<8x8xf32>
    %cst_33 = arith.constant dense<0xFF800000> : vector<8xf32>
    %92 = vector.multi_reduction <maximumf>, %91, %cst_33 [1] : vector<8x8xf32> to vector<8xf32>
    %93 = vector.shape_cast %92 : vector<8xf32> to vector<8x1xf32>
    %94 = vector.broadcast %93 : vector<8x1xf32> to vector<8x8xf32>
    %95 = arith.subf %91, %94 : vector<8x8xf32>
    %96 = math.exp %95 : vector<8x8xf32>
    %cst_34 = arith.constant dense<0.000000e+00> : vector<8xf32>
    %97 = vector.multi_reduction <add>, %96, %cst_34 [1] : vector<8x8xf32> to vector<8xf32>
    %98 = vector.shape_cast %97 : vector<8xf32> to vector<8x1xf32>
    %99 = vector.broadcast %98 : vector<8x1xf32> to vector<8x8xf32>
    %100 = arith.divf %96, %99 : vector<8x8xf32>
    %cst_35 = arith.constant dense<0.000000e+00> : vector<8x8xf32>
    %101 = tpu.matmul %100, %88, %cst_35 {dimension_numbers = #tpu.dot_dimension_numbers<[1], [0], [0], [1], [0, 0, 1, 1], [], []>} : vector<8x8xf32>, vector<8x8xf32>, vector<8x8xf32> -> vector<8x8xf32>
    %102 = tpu.concatenate %53, %69, %85, %101 in 1 : vector<8x8xf32>, vector<8x8xf32>, vector<8x8xf32>, vector<8x8xf32> -> vector<8x32xf32>
    %103 = arith.truncf %102 : vector<8x32xf32> to vector<8x32xbf16>
    %c0_36 = arith.constant 0 : index
    %c0_37 = arith.constant 0 : index
    %c0_38 = arith.constant 0 : index
    %104 = vector.load %arg5[%c0_36, %c0_37, %c0_38] : memref<2x32x32xbf16, #tpu.memory_space<vmem>>, vector<1x32x32xbf16>
    %105 = vector.shape_cast %104 : vector<1x32x32xbf16> to vector<32x32xbf16>
    %cst_39 = arith.constant dense<0.000000e+00> : vector<8x32xf32>
    %106 = tpu.matmul %103, %105, %cst_39 {dimension_numbers = #tpu.dot_dimension_numbers<[1], [0], [0], [1], [0, 0, 1, 1], [], []>} : vector<8x32xbf16>, vector<32x32xbf16>, vector<8x32xf32> -> vector<8x32xf32>
    %107 = arith.addf %1, %106 : vector<8x32xf32>
    %c0_40 = arith.constant 0 : index
    %c0_41 = arith.constant 0 : index
    %c0_42 = arith.constant 0 : index
    %108 = vector.load %arg6[%c0_40, %c0_41, %c0_42] : memref<2x1x32xf32, #tpu.memory_space<vmem>>, vector<1x1x32xf32>
    %109 = vector.shape_cast %108 : vector<1x1x32xf32> to vector<1x32xf32>
    %110 = vector.broadcast %109 : vector<1x32xf32> to vector<8x32xf32>
    %111 = arith.addf %107, %110 : vector<8x32xf32>
    %c0_43 = arith.constant 0 : index
    %c0_44 = arith.constant 0 : index
    %c0_45 = arith.constant 0 : index
    %112 = vector.load %arg7[%c0_43, %c0_44, %c0_45] : memref<2x1x32xf32, #tpu.memory_space<vmem>>, vector<1x1x32xf32>
    %113 = vector.shape_cast %112 : vector<1x1x32xf32> to vector<1x32xf32>
    %c0_46 = arith.constant 0 : index
    %c0_47 = arith.constant 0 : index
    %c0_48 = arith.constant 0 : index
    %114 = vector.load %arg8[%c0_46, %c0_47, %c0_48] : memref<2x1x32xf32, #tpu.memory_space<vmem>>, vector<1x1x32xf32>
    %115 = vector.shape_cast %114 : vector<1x1x32xf32> to vector<1x32xf32>
    %cst_49 = arith.constant dense<0.000000e+00> : vector<8xf32>
    %116 = vector.multi_reduction <add>, %111, %cst_49 [1] : vector<8x32xf32> to vector<8xf32>
    %117 = vector.shape_cast %116 : vector<8xf32> to vector<8x1xf32>
    %cst_50 = arith.constant 3.200000e+01 : f32
    %118 = vector.broadcast %cst_50 : f32 to vector<8x1xf32>
    %119 = arith.divf %117, %118 : vector<8x1xf32>
    %120 = arith.mulf %111, %111 : vector<8x32xf32>
    %cst_51 = arith.constant dense<0.000000e+00> : vector<8xf32>
    %121 = vector.multi_reduction <add>, %120, %cst_51 [1] : vector<8x32xf32> to vector<8xf32>
    %122 = vector.shape_cast %121 : vector<8xf32> to vector<8x1xf32>
    %cst_52 = arith.constant 3.200000e+01 : f32
    %123 = vector.broadcast %cst_52 : f32 to vector<8x1xf32>
    %124 = arith.divf %122, %123 : vector<8x1xf32>
    %125 = arith.mulf %119, %119 : vector<8x1xf32>
    %126 = arith.subf %124, %125 : vector<8x1xf32>
    %127 = vector.broadcast %119 : vector<8x1xf32> to vector<8x32xf32>
    %128 = arith.subf %111, %127 : vector<8x32xf32>
    %cst_53 = arith.constant 9.99999974E-6 : f32
    %129 = vector.broadcast %cst_53 : f32 to vector<8x1xf32>
    %130 = arith.addf %126, %129 : vector<8x1xf32>
    %131 = math.rsqrt %130 : vector<8x1xf32>
    %132 = vector.broadcast %131 : vector<8x1xf32> to vector<8x32xf32>
    %133 = arith.mulf %128, %132 : vector<8x32xf32>
    %134 = vector.broadcast %113 : vector<1x32xf32> to vector<8x32xf32>
    %135 = arith.mulf %133, %134 : vector<8x32xf32>
    %136 = vector.broadcast %115 : vector<1x32xf32> to vector<8x32xf32>
    %137 = arith.addf %135, %136 : vector<8x32xf32>
    %138 = arith.truncf %137 : vector<8x32xf32> to vector<8x32xbf16>
    %c0_54 = arith.constant 0 : index
    %c0_55 = arith.constant 0 : index
    %c0_56 = arith.constant 0 : index
    %139 = vector.load %arg9[%c0_54, %c0_55, %c0_56] : memref<2x32x128xbf16, #tpu.memory_space<vmem>>, vector<1x32x128xbf16>
    %140 = vector.shape_cast %139 : vector<1x32x128xbf16> to vector<32x128xbf16>
    %cst_57 = arith.constant dense<0.000000e+00> : vector<8x128xf32>
    %141 = tpu.matmul %138, %140, %cst_57 {dimension_numbers = #tpu.dot_dimension_numbers<[1], [0], [0], [1], [0, 0, 1, 1], [], []>} : vector<8x32xbf16>, vector<32x128xbf16>, vector<8x128xf32> -> vector<8x128xf32>
    %c0_58 = arith.constant 0 : index
    %c0_59 = arith.constant 0 : index
    %c0_60 = arith.constant 0 : index
    %142 = vector.load %arg10[%c0_58, %c0_59, %c0_60] : memref<2x1x128xf32, #tpu.memory_space<vmem>>, vector<1x1x128xf32>
    %143 = vector.shape_cast %142 : vector<1x1x128xf32> to vector<1x128xf32>
    %144 = vector.broadcast %143 : vector<1x128xf32> to vector<8x128xf32>
    %145 = arith.addf %141, %144 : vector<8x128xf32>
    %cst_61 = arith.constant 5.000000e-01 : f32
    %146 = vector.broadcast %cst_61 : f32 to vector<8x128xf32>
    %147 = arith.mulf %146, %145 : vector<8x128xf32>
    %cst_62 = arith.constant 0.707106769 : f32
    %148 = vector.broadcast %cst_62 : f32 to vector<8x128xf32>
    %149 = arith.mulf %145, %148 : vector<8x128xf32>
    %150 = math.erf %149 : vector<8x128xf32>
    %cst_63 = arith.constant 1.000000e+00 : f32
    %151 = vector.broadcast %cst_63 : f32 to vector<8x128xf32>
    %152 = arith.addf %151, %150 : vector<8x128xf32>
    %153 = arith.mulf %147, %152 : vector<8x128xf32>
    %154 = arith.truncf %153 : vector<8x128xf32> to vector<8x128xbf16>
    %c0_64 = arith.constant 0 : index
    %c0_65 = arith.constant 0 : index
    %c0_66 = arith.constant 0 : index
    %155 = vector.load %arg11[%c0_64, %c0_65, %c0_66] : memref<2x128x32xbf16, #tpu.memory_space<vmem>>, vector<1x128x32xbf16>
    %156 = vector.shape_cast %155 : vector<1x128x32xbf16> to vector<128x32xbf16>
    %cst_67 = arith.constant dense<0.000000e+00> : vector<8x32xf32>
    %157 = tpu.matmul %154, %156, %cst_67 {dimension_numbers = #tpu.dot_dimension_numbers<[1], [0], [0], [1], [0, 0, 1, 1], [], []>} : vector<8x128xbf16>, vector<128x32xbf16>, vector<8x32xf32> -> vector<8x32xf32>
    %158 = arith.addf %111, %157 : vector<8x32xf32>
    %c0_68 = arith.constant 0 : index
    %c0_69 = arith.constant 0 : index
    %c0_70 = arith.constant 0 : index
    %159 = vector.load %arg12[%c0_68, %c0_69, %c0_70] : memref<2x1x32xf32, #tpu.memory_space<vmem>>, vector<1x1x32xf32>
    %160 = vector.shape_cast %159 : vector<1x1x32xf32> to vector<1x32xf32>
    %161 = vector.broadcast %160 : vector<1x32xf32> to vector<8x32xf32>
    %162 = arith.addf %158, %161 : vector<8x32xf32>
    %c1 = arith.constant 1 : index
    %c0_71 = arith.constant 0 : index
    %c0_72 = arith.constant 0 : index
    %163 = vector.load %arg2[%c1, %c0_71, %c0_72] : memref<2x1x32xf32, #tpu.memory_space<vmem>>, vector<1x1x32xf32>
    %164 = vector.shape_cast %163 : vector<1x1x32xf32> to vector<1x32xf32>
    %c1_73 = arith.constant 1 : index
    %c0_74 = arith.constant 0 : index
    %c0_75 = arith.constant 0 : index
    %165 = vector.load %arg3[%c1_73, %c0_74, %c0_75] : memref<2x1x32xf32, #tpu.memory_space<vmem>>, vector<1x1x32xf32>
    %166 = vector.shape_cast %165 : vector<1x1x32xf32> to vector<1x32xf32>
    %cst_76 = arith.constant dense<0.000000e+00> : vector<8xf32>
    %167 = vector.multi_reduction <add>, %162, %cst_76 [1] : vector<8x32xf32> to vector<8xf32>
    %168 = vector.shape_cast %167 : vector<8xf32> to vector<8x1xf32>
    %cst_77 = arith.constant 3.200000e+01 : f32
    %169 = vector.broadcast %cst_77 : f32 to vector<8x1xf32>
    %170 = arith.divf %168, %169 : vector<8x1xf32>
    %171 = arith.mulf %162, %162 : vector<8x32xf32>
    %cst_78 = arith.constant dense<0.000000e+00> : vector<8xf32>
    %172 = vector.multi_reduction <add>, %171, %cst_78 [1] : vector<8x32xf32> to vector<8xf32>
    %173 = vector.shape_cast %172 : vector<8xf32> to vector<8x1xf32>
    %cst_79 = arith.constant 3.200000e+01 : f32
    %174 = vector.broadcast %cst_79 : f32 to vector<8x1xf32>
    %175 = arith.divf %173, %174 : vector<8x1xf32>
    %176 = arith.mulf %170, %170 : vector<8x1xf32>
    %177 = arith.subf %175, %176 : vector<8x1xf32>
    %178 = vector.broadcast %170 : vector<8x1xf32> to vector<8x32xf32>
    %179 = arith.subf %162, %178 : vector<8x32xf32>
    %cst_80 = arith.constant 9.99999974E-6 : f32
    %180 = vector.broadcast %cst_80 : f32 to vector<8x1xf32>
    %181 = arith.addf %177, %180 : vector<8x1xf32>
    %182 = math.rsqrt %181 : vector<8x1xf32>
    %183 = vector.broadcast %182 : vector<8x1xf32> to vector<8x32xf32>
    %184 = arith.mulf %179, %183 : vector<8x32xf32>
    %185 = vector.broadcast %164 : vector<1x32xf32> to vector<8x32xf32>
    %186 = arith.mulf %184, %185 : vector<8x32xf32>
    %187 = vector.broadcast %166 : vector<1x32xf32> to vector<8x32xf32>
    %188 = arith.addf %186, %187 : vector<8x32xf32>
    %189 = arith.truncf %188 : vector<8x32xf32> to vector<8x32xbf16>
    %c1_81 = arith.constant 1 : index
    %c0_82 = arith.constant 0 : index
    %c0_83 = arith.constant 0 : index
    %190 = vector.load %arg4[%c1_81, %c0_82, %c0_83] : memref<2x32x96xbf16, #tpu.memory_space<vmem>>, vector<1x32x96xbf16>
    %191 = vector.shape_cast %190 : vector<1x32x96xbf16> to vector<32x96xbf16>
    %cst_84 = arith.constant dense<0.000000e+00> : vector<8x96xf32>
    %192 = tpu.matmul %189, %191, %cst_84 {dimension_numbers = #tpu.dot_dimension_numbers<[1], [0], [0], [1], [0, 0, 1, 1], [], []>} : vector<8x32xbf16>, vector<32x96xbf16>, vector<8x96xf32> -> vector<8x96xf32>
    %193 = vector.extract_strided_slice %192 {offsets = [0, 0], sizes = [8, 32], strides = [1, 1]} : vector<8x96xf32> to vector<8x32xf32>
    %194 = vector.extract_strided_slice %192 {offsets = [0, 32], sizes = [8, 32], strides = [1, 1]} : vector<8x96xf32> to vector<8x32xf32>
    %195 = vector.extract_strided_slice %192 {offsets = [0, 64], sizes = [8, 32], strides = [1, 1]} : vector<8x96xf32> to vector<8x32xf32>
    %196 = vector.extract_strided_slice %193 {offsets = [0, 0], sizes = [8, 8], strides = [1, 1]} : vector<8x32xf32> to vector<8x8xf32>
    %197 = vector.extract_strided_slice %194 {offsets = [0, 0], sizes = [8, 8], strides = [1, 1]} : vector<8x32xf32> to vector<8x8xf32>
    %198 = vector.extract_strided_slice %195 {offsets = [0, 0], sizes = [8, 8], strides = [1, 1]} : vector<8x32xf32> to vector<8x8xf32>
    %cst_85 = arith.constant dense<0.000000e+00> : vector<8x8xf32>
    %199 = tpu.matmul %196, %197, %cst_85 {dimension_numbers = #tpu.dot_dimension_numbers<[1], [1], [0], [0], [0, 0, 1, 0], [], []>} : vector<8x8xf32>, vector<8x8xf32>, vector<8x8xf32> -> vector<8x8xf32>
    %cst_86 = arith.constant -9.99999968E+37 : f32
    %200 = vector.broadcast %cst_86 : f32 to vector<8x8xf32>
    %201 = arith.select %4, %199, %200 : vector<8x8xi1>, vector<8x8xf32>
    %cst_87 = arith.constant dense<0xFF800000> : vector<8xf32>
    %202 = vector.multi_reduction <maximumf>, %201, %cst_87 [1] : vector<8x8xf32> to vector<8xf32>
    %203 = vector.shape_cast %202 : vector<8xf32> to vector<8x1xf32>
    %204 = vector.broadcast %203 : vector<8x1xf32> to vector<8x8xf32>
    %205 = arith.subf %201, %204 : vector<8x8xf32>
    %206 = math.exp %205 : vector<8x8xf32>
    %cst_88 = arith.constant dense<0.000000e+00> : vector<8xf32>
    %207 = vector.multi_reduction <add>, %206, %cst_88 [1] : vector<8x8xf32> to vector<8xf32>
    %208 = vector.shape_cast %207 : vector<8xf32> to vector<8x1xf32>
    %209 = vector.broadcast %208 : vector<8x1xf32> to vector<8x8xf32>
    %210 = arith.divf %206, %209 : vector<8x8xf32>
    %cst_89 = arith.constant dense<0.000000e+00> : vector<8x8xf32>
    %211 = tpu.matmul %210, %198, %cst_89 {dimension_numbers = #tpu.dot_dimension_numbers<[1], [0], [0], [1], [0, 0, 1, 1], [], []>} : vector<8x8xf32>, vector<8x8xf32>, vector<8x8xf32> -> vector<8x8xf32>
    %212 = vector.extract_strided_slice %193 {offsets = [0, 8], sizes = [8, 8], strides = [1, 1]} : vector<8x32xf32> to vector<8x8xf32>
    %213 = vector.extract_strided_slice %194 {offsets = [0, 8], sizes = [8, 8], strides = [1, 1]} : vector<8x32xf32> to vector<8x8xf32>
    %214 = vector.extract_strided_slice %195 {offsets = [0, 8], sizes = [8, 8], strides = [1, 1]} : vector<8x32xf32> to vector<8x8xf32>
    %cst_90 = arith.constant dense<0.000000e+00> : vector<8x8xf32>
    %215 = tpu.matmul %212, %213, %cst_90 {dimension_numbers = #tpu.dot_dimension_numbers<[1], [1], [0], [0], [0, 0, 1, 0], [], []>} : vector<8x8xf32>, vector<8x8xf32>, vector<8x8xf32> -> vector<8x8xf32>
    %cst_91 = arith.constant -9.99999968E+37 : f32
    %216 = vector.broadcast %cst_91 : f32 to vector<8x8xf32>
    %217 = arith.select %4, %215, %216 : vector<8x8xi1>, vector<8x8xf32>
    %cst_92 = arith.constant dense<0xFF800000> : vector<8xf32>
    %218 = vector.multi_reduction <maximumf>, %217, %cst_92 [1] : vector<8x8xf32> to vector<8xf32>
    %219 = vector.shape_cast %218 : vector<8xf32> to vector<8x1xf32>
    %220 = vector.broadcast %219 : vector<8x1xf32> to vector<8x8xf32>
    %221 = arith.subf %217, %220 : vector<8x8xf32>
    %222 = math.exp %221 : vector<8x8xf32>
    %cst_93 = arith.constant dense<0.000000e+00> : vector<8xf32>
    %223 = vector.multi_reduction <add>, %222, %cst_93 [1] : vector<8x8xf32> to vector<8xf32>
    %224 = vector.shape_cast %223 : vector<8xf32> to vector<8x1xf32>
    %225 = vector.broadcast %224 : vector<8x1xf32> to vector<8x8xf32>
    %226 = arith.divf %222, %225 : vector<8x8xf32>
    %cst_94 = arith.constant dense<0.000000e+00> : vector<8x8xf32>
    %227 = tpu.matmul %226, %214, %cst_94 {dimension_numbers = #tpu.dot_dimension_numbers<[1], [0], [0], [1], [0, 0, 1, 1], [], []>} : vector<8x8xf32>, vector<8x8xf32>, vector<8x8xf32> -> vector<8x8xf32>
    %228 = vector.extract_strided_slice %193 {offsets = [0, 16], sizes = [8, 8], strides = [1, 1]} : vector<8x32xf32> to vector<8x8xf32>
    %229 = vector.extract_strided_slice %194 {offsets = [0, 16], sizes = [8, 8], strides = [1, 1]} : vector<8x32xf32> to vector<8x8xf32>
    %230 = vector.extract_strided_slice %195 {offsets = [0, 16], sizes = [8, 8], strides = [1, 1]} : vector<8x32xf32> to vector<8x8xf32>
    %cst_95 = arith.constant dense<0.000000e+00> : vector<8x8xf32>
    %231 = tpu.matmul %228, %229, %cst_95 {dimension_numbers = #tpu.dot_dimension_numbers<[1], [1], [0], [0], [0, 0, 1, 0], [], []>} : vector<8x8xf32>, vector<8x8xf32>, vector<8x8xf32> -> vector<8x8xf32>
    %cst_96 = arith.constant -9.99999968E+37 : f32
    %232 = vector.broadcast %cst_96 : f32 to vector<8x8xf32>
    %233 = arith.select %4, %231, %232 : vector<8x8xi1>, vector<8x8xf32>
    %cst_97 = arith.constant dense<0xFF800000> : vector<8xf32>
    %234 = vector.multi_reduction <maximumf>, %233, %cst_97 [1] : vector<8x8xf32> to vector<8xf32>
    %235 = vector.shape_cast %234 : vector<8xf32> to vector<8x1xf32>
    %236 = vector.broadcast %235 : vector<8x1xf32> to vector<8x8xf32>
    %237 = arith.subf %233, %236 : vector<8x8xf32>
    %238 = math.exp %237 : vector<8x8xf32>
    %cst_98 = arith.constant dense<0.000000e+00> : vector<8xf32>
    %239 = vector.multi_reduction <add>, %238, %cst_98 [1] : vector<8x8xf32> to vector<8xf32>
    %240 = vector.shape_cast %239 : vector<8xf32> to vector<8x1xf32>
    %241 = vector.broadcast %240 : vector<8x1xf32> to vector<8x8xf32>
    %242 = arith.divf %238, %241 : vector<8x8xf32>
    %cst_99 = arith.constant dense<0.000000e+00> : vector<8x8xf32>
    %243 = tpu.matmul %242, %230, %cst_99 {dimension_numbers = #tpu.dot_dimension_numbers<[1], [0], [0], [1], [0, 0, 1, 1], [], []>} : vector<8x8xf32>, vector<8x8xf32>, vector<8x8xf32> -> vector<8x8xf32>
    %244 = vector.extract_strided_slice %193 {offsets = [0, 24], sizes = [8, 8], strides = [1, 1]} : vector<8x32xf32> to vector<8x8xf32>
    %245 = vector.extract_strided_slice %194 {offsets = [0, 24], sizes = [8, 8], strides = [1, 1]} : vector<8x32xf32> to vector<8x8xf32>
    %246 = vector.extract_strided_slice %195 {offsets = [0, 24], sizes = [8, 8], strides = [1, 1]} : vector<8x32xf32> to vector<8x8xf32>
    %cst_100 = arith.constant dense<0.000000e+00> : vector<8x8xf32>
    %247 = tpu.matmul %244, %245, %cst_100 {dimension_numbers = #tpu.dot_dimension_numbers<[1], [1], [0], [0], [0, 0, 1, 0], [], []>} : vector<8x8xf32>, vector<8x8xf32>, vector<8x8xf32> -> vector<8x8xf32>
    %cst_101 = arith.constant -9.99999968E+37 : f32
    %248 = vector.broadcast %cst_101 : f32 to vector<8x8xf32>
    %249 = arith.select %4, %247, %248 : vector<8x8xi1>, vector<8x8xf32>
    %cst_102 = arith.constant dense<0xFF800000> : vector<8xf32>
    %250 = vector.multi_reduction <maximumf>, %249, %cst_102 [1] : vector<8x8xf32> to vector<8xf32>
    %251 = vector.shape_cast %250 : vector<8xf32> to vector<8x1xf32>
    %252 = vector.broadcast %251 : vector<8x1xf32> to vector<8x8xf32>
    %253 = arith.subf %249, %252 : vector<8x8xf32>
    %254 = math.exp %253 : vector<8x8xf32>
    %cst_103 = arith.constant dense<0.000000e+00> : vector<8xf32>
    %255 = vector.multi_reduction <add>, %254, %cst_103 [1] : vector<8x8xf32> to vector<8xf32>
    %256 = vector.shape_cast %255 : vector<8xf32> to vector<8x1xf32>
    %257 = vector.broadcast %256 : vector<8x1xf32> to vector<8x8xf32>
    %258 = arith.divf %254, %257 : vector<8x8xf32>
    %cst_104 = arith.constant dense<0.000000e+00> : vector<8x8xf32>
    %259 = tpu.matmul %258, %246, %cst_104 {dimension_numbers = #tpu.dot_dimension_numbers<[1], [0], [0], [1], [0, 0, 1, 1], [], []>} : vector<8x8xf32>, vector<8x8xf32>, vector<8x8xf32> -> vector<8x8xf32>
    %260 = tpu.concatenate %211, %227, %243, %259 in 1 : vector<8x8xf32>, vector<8x8xf32>, vector<8x8xf32>, vector<8x8xf32> -> vector<8x32xf32>
    %261 = arith.truncf %260 : vector<8x32xf32> to vector<8x32xbf16>
    %c1_105 = arith.constant 1 : index
    %c0_106 = arith.constant 0 : index
    %c0_107 = arith.constant 0 : index
    %262 = vector.load %arg5[%c1_105, %c0_106, %c0_107] : memref<2x32x32xbf16, #tpu.memory_space<vmem>>, vector<1x32x32xbf16>
    %263 = vector.shape_cast %262 : vector<1x32x32xbf16> to vector<32x32xbf16>
    %cst_108 = arith.constant dense<0.000000e+00> : vector<8x32xf32>
    %264 = tpu.matmul %261, %263, %cst_108 {dimension_numbers = #tpu.dot_dimension_numbers<[1], [0], [0], [1], [0, 0, 1, 1], [], []>} : vector<8x32xbf16>, vector<32x32xbf16>, vector<8x32xf32> -> vector<8x32xf32>
    %265 = arith.addf %162, %264 : vector<8x32xf32>
    %c1_109 = arith.constant 1 : index
    %c0_110 = arith.constant 0 : index
    %c0_111 = arith.constant 0 : index
    %266 = vector.load %arg6[%c1_109, %c0_110, %c0_111] : memref<2x1x32xf32, #tpu.memory_space<vmem>>, vector<1x1x32xf32>
    %267 = vector.shape_cast %266 : vector<1x1x32xf32> to vector<1x32xf32>
    %268 = vector.broadcast %267 : vector<1x32xf32> to vector<8x32xf32>
    %269 = arith.addf %265, %268 : vector<8x32xf32>
    %c1_112 = arith.constant 1 : index
    %c0_113 = arith.constant 0 : index
    %c0_114 = arith.constant 0 : index
    %270 = vector.load %arg7[%c1_112, %c0_113, %c0_114] : memref<2x1x32xf32, #tpu.memory_space<vmem>>, vector<1x1x32xf32>
    %271 = vector.shape_cast %270 : vector<1x1x32xf32> to vector<1x32xf32>
    %c1_115 = arith.constant 1 : index
    %c0_116 = arith.constant 0 : index
    %c0_117 = arith.constant 0 : index
    %272 = vector.load %arg8[%c1_115, %c0_116, %c0_117] : memref<2x1x32xf32, #tpu.memory_space<vmem>>, vector<1x1x32xf32>
    %273 = vector.shape_cast %272 : vector<1x1x32xf32> to vector<1x32xf32>
    %cst_118 = arith.constant dense<0.000000e+00> : vector<8xf32>
    %274 = vector.multi_reduction <add>, %269, %cst_118 [1] : vector<8x32xf32> to vector<8xf32>
    %275 = vector.shape_cast %274 : vector<8xf32> to vector<8x1xf32>
    %cst_119 = arith.constant 3.200000e+01 : f32
    %276 = vector.broadcast %cst_119 : f32 to vector<8x1xf32>
    %277 = arith.divf %275, %276 : vector<8x1xf32>
    %278 = arith.mulf %269, %269 : vector<8x32xf32>
    %cst_120 = arith.constant dense<0.000000e+00> : vector<8xf32>
    %279 = vector.multi_reduction <add>, %278, %cst_120 [1] : vector<8x32xf32> to vector<8xf32>
    %280 = vector.shape_cast %279 : vector<8xf32> to vector<8x1xf32>
    %cst_121 = arith.constant 3.200000e+01 : f32
    %281 = vector.broadcast %cst_121 : f32 to vector<8x1xf32>
    %282 = arith.divf %280, %281 : vector<8x1xf32>
    %283 = arith.mulf %277, %277 : vector<8x1xf32>
    %284 = arith.subf %282, %283 : vector<8x1xf32>
    %285 = vector.broadcast %277 : vector<8x1xf32> to vector<8x32xf32>
    %286 = arith.subf %269, %285 : vector<8x32xf32>
    %cst_122 = arith.constant 9.99999974E-6 : f32
    %287 = vector.broadcast %cst_122 : f32 to vector<8x1xf32>
    %288 = arith.addf %284, %287 : vector<8x1xf32>
    %289 = math.rsqrt %288 : vector<8x1xf32>
    %290 = vector.broadcast %289 : vector<8x1xf32> to vector<8x32xf32>
    %291 = arith.mulf %286, %290 : vector<8x32xf32>
    %292 = vector.broadcast %271 : vector<1x32xf32> to vector<8x32xf32>
    %293 = arith.mulf %291, %292 : vector<8x32xf32>
    %294 = vector.broadcast %273 : vector<1x32xf32> to vector<8x32xf32>
    %295 = arith.addf %293, %294 : vector<8x32xf32>
    %296 = arith.truncf %295 : vector<8x32xf32> to vector<8x32xbf16>
    %c1_123 = arith.constant 1 : index
    %c0_124 = arith.constant 0 : index
    %c0_125 = arith.constant 0 : index
    %297 = vector.load %arg9[%c1_123, %c0_124, %c0_125] : memref<2x32x128xbf16, #tpu.memory_space<vmem>>, vector<1x32x128xbf16>
    %298 = vector.shape_cast %297 : vector<1x32x128xbf16> to vector<32x128xbf16>
    %cst_126 = arith.constant dense<0.000000e+00> : vector<8x128xf32>
    %299 = tpu.matmul %296, %298, %cst_126 {dimension_numbers = #tpu.dot_dimension_numbers<[1], [0], [0], [1], [0, 0, 1, 1], [], []>} : vector<8x32xbf16>, vector<32x128xbf16>, vector<8x128xf32> -> vector<8x128xf32>
    %c1_127 = arith.constant 1 : index
    %c0_128 = arith.constant 0 : index
    %c0_129 = arith.constant 0 : index
    %300 = vector.load %arg10[%c1_127, %c0_128, %c0_129] : memref<2x1x128xf32, #tpu.memory_space<vmem>>, vector<1x1x128xf32>
    %301 = vector.shape_cast %300 : vector<1x1x128xf32> to vector<1x128xf32>
    %302 = vector.broadcast %301 : vector<1x128xf32> to vector<8x128xf32>
    %303 = arith.addf %299, %302 : vector<8x128xf32>
    %cst_130 = arith.constant 5.000000e-01 : f32
    %304 = vector.broadcast %cst_130 : f32 to vector<8x128xf32>
    %305 = arith.mulf %304, %303 : vector<8x128xf32>
    %cst_131 = arith.constant 0.707106769 : f32
    %306 = vector.broadcast %cst_131 : f32 to vector<8x128xf32>
    %307 = arith.mulf %303, %306 : vector<8x128xf32>
    %308 = math.erf %307 : vector<8x128xf32>
    %cst_132 = arith.constant 1.000000e+00 : f32
    %309 = vector.broadcast %cst_132 : f32 to vector<8x128xf32>
    %310 = arith.addf %309, %308 : vector<8x128xf32>
    %311 = arith.mulf %305, %310 : vector<8x128xf32>
    %312 = arith.truncf %311 : vector<8x128xf32> to vector<8x128xbf16>
    %c1_133 = arith.constant 1 : index
    %c0_134 = arith.constant 0 : index
    %c0_135 = arith.constant 0 : index
    %313 = vector.load %arg11[%c1_133, %c0_134, %c0_135] : memref<2x128x32xbf16, #tpu.memory_space<vmem>>, vector<1x128x32xbf16>
    %314 = vector.shape_cast %313 : vector<1x128x32xbf16> to vector<128x32xbf16>
    %cst_136 = arith.constant dense<0.000000e+00> : vector<8x32xf32>
    %315 = tpu.matmul %312, %314, %cst_136 {dimension_numbers = #tpu.dot_dimension_numbers<[1], [0], [0], [1], [0, 0, 1, 1], [], []>} : vector<8x128xbf16>, vector<128x32xbf16>, vector<8x32xf32> -> vector<8x32xf32>
    %316 = arith.addf %269, %315 : vector<8x32xf32>
    %c1_137 = arith.constant 1 : index
    %c0_138 = arith.constant 0 : index
    %c0_139 = arith.constant 0 : index
    %317 = vector.load %arg12[%c1_137, %c0_138, %c0_139] : memref<2x1x32xf32, #tpu.memory_space<vmem>>, vector<1x1x32xf32>
    %318 = vector.shape_cast %317 : vector<1x1x32xf32> to vector<1x32xf32>
    %319 = vector.broadcast %318 : vector<1x32xf32> to vector<8x32xf32>
    %320 = arith.addf %316, %319 : vector<8x32xf32>
    %c0_140 = arith.constant 0 : index
    %c0_141 = arith.constant 0 : index
    %321 = vector.load %arg13[%c0_140, %c0_141] : memref<1x32xf32, #tpu.memory_space<vmem>>, vector<1x32xf32>
    %c0_142 = arith.constant 0 : index
    %c0_143 = arith.constant 0 : index
    %322 = vector.load %arg14[%c0_142, %c0_143] : memref<1x32xf32, #tpu.memory_space<vmem>>, vector<1x32xf32>
    %cst_144 = arith.constant dense<0.000000e+00> : vector<8xf32>
    %323 = vector.multi_reduction <add>, %320, %cst_144 [1] : vector<8x32xf32> to vector<8xf32>
    %324 = vector.shape_cast %323 : vector<8xf32> to vector<8x1xf32>
    %cst_145 = arith.constant 3.200000e+01 : f32
    %325 = vector.broadcast %cst_145 : f32 to vector<8x1xf32>
    %326 = arith.divf %324, %325 : vector<8x1xf32>
    %327 = arith.mulf %320, %320 : vector<8x32xf32>
    %cst_146 = arith.constant dense<0.000000e+00> : vector<8xf32>
    %328 = vector.multi_reduction <add>, %327, %cst_146 [1] : vector<8x32xf32> to vector<8xf32>
    %329 = vector.shape_cast %328 : vector<8xf32> to vector<8x1xf32>
    %cst_147 = arith.constant 3.200000e+01 : f32
    %330 = vector.broadcast %cst_147 : f32 to vector<8x1xf32>
    %331 = arith.divf %329, %330 : vector<8x1xf32>
    %332 = arith.mulf %326, %326 : vector<8x1xf32>
    %333 = arith.subf %331, %332 : vector<8x1xf32>
    %334 = vector.broadcast %326 : vector<8x1xf32> to vector<8x32xf32>
    %335 = arith.subf %320, %334 : vector<8x32xf32>
    %cst_148 = arith.constant 9.99999974E-6 : f32
    %336 = vector.broadcast %cst_148 : f32 to vector<8x1xf32>
    %337 = arith.addf %333, %336 : vector<8x1xf32>
    %338 = math.rsqrt %337 : vector<8x1xf32>
    %339 = vector.broadcast %338 : vector<8x1xf32> to vector<8x32xf32>
    %340 = arith.mulf %335, %339 : vector<8x32xf32>
    %341 = vector.broadcast %321 : vector<1x32xf32> to vector<8x32xf32>
    %342 = arith.mulf %340, %341 : vector<8x32xf32>
    %343 = vector.broadcast %322 : vector<1x32xf32> to vector<8x32xf32>
    %344 = arith.addf %342, %343 : vector<8x32xf32>
    %345 = arith.truncf %344 : vector<8x32xf32> to vector<8x32xbf16>
    %c0_149 = arith.constant 0 : index
    %c0_150 = arith.constant 0 : index
    %346 = vector.load %arg15[%c0_149, %c0_150] : memref<32x128xbf16, #tpu.memory_space<vmem>>, vector<32x128xbf16>
    %cst_151 = arith.constant dense<0.000000e+00> : vector<8x128xf32>
    %347 = tpu.matmul %345, %346, %cst_151 {dimension_numbers = #tpu.dot_dimension_numbers<[1], [0], [0], [1], [0, 0, 1, 1], [], []>} : vector<8x32xbf16>, vector<32x128xbf16>, vector<8x128xf32> -> vector<8x128xf32>
    %c0_152 = arith.constant 0 : index
    %c0_153 = arith.constant 0 : index
    %c0_154 = arith.constant 0 : index
    %348 = vector.load %arg16[%c0_152, %c0_153, %c0_154] : memref<1x8x128xf32, #tpu.memory_space<vmem>>, vector<1x8x128xf32>
    %349 = vector.shape_cast %348 : vector<1x8x128xf32> to vector<8x128xf32>
    %350 = vector.shape_cast %347 : vector<8x128xf32> to vector<1x8x128xf32>
    tpu.vector_store %arg16[%c0_152, %c0_153, %c0_154], %350 {strides = array<i32>} : memref<1x8x128xf32, #tpu.memory_space<vmem>>, vector<1x8x128xf32>,
    %351 = tpu.concatenate %36, %194, %37, %195 in 1 : vector<8x32xf32>, vector<8x32xf32>, vector<8x32xf32>, vector<8x32xf32> -> vector<8x128xf32>
    %cst_155 = arith.constant 0.000000e+00 : f32
    %352 = vector.broadcast %cst_155 : f32 to vector<8x128xf32>
    %353 = tpu.concatenate %351, %352 in 0 : vector<8x128xf32>, vector<8x128xf32> -> vector<16x128xf32>
    %c0_156 = arith.constant 0 : index
    %c0_157 = arith.constant 0 : index
    %c0_158 = arith.constant 0 : index
    %354 = vector.load %arg17[%c0_156, %c0_157, %c0_158] : memref<1x16x128xf32, #tpu.memory_space<vmem>>, vector<1x16x128xf32>
    %355 = vector.shape_cast %354 : vector<1x16x128xf32> to vector<16x128xf32>
    %356 = vector.shape_cast %353 : vector<16x128xf32> to vector<1x16x128xf32>
    tpu.vector_store %arg17[%c0_156, %c0_157, %c0_158], %356 {strides = array<i32>} : memref<1x16x128xf32, #tpu.memory_space<vmem>>, vector<1x16x128xf32>,
    return
  }
  func.func @transform_0(%arg0: i32) -> (i32, i32, i32) {
    %c0_i32 = arith.constant 0 : i32
    %c0_i32_0 = arith.constant 0 : i32
    %c0_i32_1 = arith.constant 0 : i32
    return %arg0, %c0_i32, %c0_i32_0 : i32, i32, i32
  }
  func.func @transform_1(%arg0: i32) -> (i32, i32, i32) {
    %c0_i32 = arith.constant 0 : i32
    %c0_i32_0 = arith.constant 0 : i32
    %c0_i32_1 = arith.constant 0 : i32
    %c0_i32_2 = arith.constant 0 : i32
    return %c0_i32, %c0_i32_0, %c0_i32_1 : i32, i32, i32
  }
  func.func @transform_2(%arg0: i32) -> (i32, i32, i32) {
    %c0_i32 = arith.constant 0 : i32
    %c0_i32_0 = arith.constant 0 : i32
    %c0_i32_1 = arith.constant 0 : i32
    %c0_i32_2 = arith.constant 0 : i32
    return %c0_i32, %c0_i32_0, %c0_i32_1 : i32, i32, i32
  }
  func.func @transform_3(%arg0: i32) -> (i32, i32, i32) {
    %c0_i32 = arith.constant 0 : i32
    %c0_i32_0 = arith.constant 0 : i32
    %c0_i32_1 = arith.constant 0 : i32
    %c0_i32_2 = arith.constant 0 : i32
    return %c0_i32, %c0_i32_0, %c0_i32_1 : i32, i32, i32
  }
  func.func @transform_4(%arg0: i32) -> (i32, i32, i32) {
    %c0_i32 = arith.constant 0 : i32
    %c0_i32_0 = arith.constant 0 : i32
    %c0_i32_1 = arith.constant 0 : i32
    %c0_i32_2 = arith.constant 0 : i32
    return %c0_i32, %c0_i32_0, %c0_i32_1 : i32, i32, i32
  }
  func.func @transform_5(%arg0: i32) -> (i32, i32, i32) {
    %c0_i32 = arith.constant 0 : i32
    %c0_i32_0 = arith.constant 0 : i32
    %c0_i32_1 = arith.constant 0 : i32
    %c0_i32_2 = arith.constant 0 : i32
    return %c0_i32, %c0_i32_0, %c0_i32_1 : i32, i32, i32
  }
  func.func @transform_6(%arg0: i32) -> (i32, i32, i32) {
    %c0_i32 = arith.constant 0 : i32
    %c0_i32_0 = arith.constant 0 : i32
    %c0_i32_1 = arith.constant 0 : i32
    %c0_i32_2 = arith.constant 0 : i32
    return %c0_i32, %c0_i32_0, %c0_i32_1 : i32, i32, i32
  }
  func.func @transform_7(%arg0: i32) -> (i32, i32, i32) {
    %c0_i32 = arith.constant 0 : i32
    %c0_i32_0 = arith.constant 0 : i32
    %c0_i32_1 = arith.constant 0 : i32
    %c0_i32_2 = arith.constant 0 : i32
    return %c0_i32, %c0_i32_0, %c0_i32_1 : i32, i32, i32
  }
  func.func @transform_8(%arg0: i32) -> (i32, i32, i32) {
    %c0_i32 = arith.constant 0 : i32
    %c0_i32_0 = arith.constant 0 : i32
    %c0_i32_1 = arith.constant 0 : i32
    %c0_i32_2 = arith.constant 0 : i32
    return %c0_i32, %c0_i32_0, %c0_i32_1 : i32, i32, i32
  }
  func.func @transform_9(%arg0: i32) -> (i32, i32, i32) {
    %c0_i32 = arith.constant 0 : i32
    %c0_i32_0 = arith.constant 0 : i32
    %c0_i32_1 = arith.constant 0 : i32
    %c0_i32_2 = arith.constant 0 : i32
    return %c0_i32, %c0_i32_0, %c0_i32_1 : i32, i32, i32
  }
  func.func @transform_10(%arg0: i32) -> (i32, i32, i32) {
    %c0_i32 = arith.constant 0 : i32
    %c0_i32_0 = arith.constant 0 : i32
    %c0_i32_1 = arith.constant 0 : i32
    %c0_i32_2 = arith.constant 0 : i32
    return %c0_i32, %c0_i32_0, %c0_i32_1 : i32, i32, i32
  }
  func.func @transform_11(%arg0: i32) -> (i32, i32, i32) {
    %c0_i32 = arith.constant 0 : i32
    %c0_i32_0 = arith.constant 0 : i32
    %c0_i32_1 = arith.constant 0 : i32
    %c0_i32_2 = arith.constant 0 : i32
    return %c0_i32, %c0_i32_0, %c0_i32_1 : i32, i32, i32
  }
  func.func @transform_12(%arg0: i32) -> (i32, i32) {
    %c0_i32 = arith.constant 0 : i32
    %c0_i32_0 = arith.constant 0 : i32
    %c0_i32_1 = arith.constant 0 : i32
    return %c0_i32, %c0_i32_0 : i32, i32
  }
  func.func @transform_13(%arg0: i32) -> (i32, i32) {
    %c0_i32 = arith.constant 0 : i32
    %c0_i32_0 = arith.constant 0 : i32
    %c0_i32_1 = arith.constant 0 : i32
    return %c0_i32, %c0_i32_0 : i32, i32
  }
  func.func @transform_14(%arg0: i32) -> (i32, i32) {
    %c0_i32 = arith.constant 0 : i32
    %c0_i32_0 = arith.constant 0 : i32
    %c0_i32_1 = arith.constant 0 : i32
    return %c0_i32, %c0_i32_0 : i32, i32
  }
  func.func @transform_15(%arg0: i32) -> (i32, i32, i32) {
    %c0_i32 = arith.constant 0 : i32
    %c0_i32_0 = arith.constant 0 : i32
    %c0_i32_1 = arith.constant 0 : i32
    return %arg0, %c0_i32, %c0_i32_0 : i32, i32, i32
  }
  func.func @transform_16(%arg0: i32) -> (i32, i32, i32) {
    %c0_i32 = arith.constant 0 : i32
    %c0_i32_0 = arith.constant 0 : i32
    %c0_i32_1 = arith.constant 0 : i32
    return %arg0, %c0_i32, %c0_i32_0 : i32, i32, i32
  }
}

</mosaic_0001>

<bundles_post_ra>
// kernel: gptneo_forward.1
= control target key start
LH: loop header
LB: loop body
LE: loop exit
PB: predicated region body
PF: predicated region fallthrough
CT: control target
= control target key end

     0   :  { %s2960_s0 = inlined_call_operand.vmem [shape: f32[2,8,32], index: 0, kind: input, shape index: {}]   ;;  %s2961_s1 = inlined_call_operand.vmem [shape: f32[2,1,32], index: 1, kind: input, shape index: {}]   ;;  %s2962_s2 = inlined_call_operand.vmem [shape: f32[2,1,32], index: 2, kind: input, shape index: {}]   ;;  %s2963_s3 = inlined_call_operand.vmem [shape: bf16[2,32,96], index: 3, kind: input, shape index: {}]   ;;  %s2964_s4 = inlined_call_operand.vmem [shape: bf16[2,32,32], index: 4, kind: input, shape index: {}]   ;;  %s2965_s5 = inlined_call_operand.vmem [shape: f32[2,1,32], index: 5, kind: input, shape index: {}]   ;;  %s2966_s6 = inlined_call_operand.vmem [shape: f32[2,1,32], index: 6, kind: input, shape index: {}]   ;;  %s2967_s7 = inlined_call_operand.vmem [shape: f32[2,1,32], index: 7, kind: input, shape index: {}]   ;;  %s2968_s8 = inlined_call_operand.vmem [shape: bf16[2,32,128], index: 8, kind: input, shape index: {}]   ;;  %s2969_s9 = inlined_call_operand.vmem [shape: f32[2,1,128], index: 9, kind: input, shape index: {}]   ;;  %s2970_s10 = inlined_call_operand.vmem [shape: bf16[2,128,32], index: 10, kind: input, shape index: {}]   ;;  %s2971_s11 = inlined_call_operand.vmem [shape: f32[2,1,32], index: 11, kind: input, shape index: {}]   ;;  %s2972_s12 = inlined_call_operand.vmem [shape: f32[1,32], index: 12, kind: input, shape index: {}]   ;;  %s2973_s13 = inlined_call_operand.vmem [shape: f32[1,32], index: 13, kind: input, shape index: {}]   ;;  %s2974_s14 = inlined_call_operand.vmem [shape: bf16[32,128], index: 14, kind: input, shape index: {}]   ;;  %s2975_s15 = inlined_call_operand.hbm [shape: f32[2,8,128], index: 15, kind: output, shape index: {0}]   ;;  %s2976_s16 = inlined_call_operand.vmem [shape: f32[2,16,128], index: 16, kind: output, shape index: {1}]  }
   0x1   :  { %2994 = sst [smem:[#allocation8_spill]] %s2960_s0 }
   0x2   :  { %2995 = sst [smem:[#allocation9_spill]] %s2961_s1 }
   0x3   :  { %2996 = sst [smem:[#allocation10_spill]] %s2962_s2 }
   0x4   :  { %2997 = sst [smem:[#allocation11_spill]] %s2963_s3 }
   0x5   :  { %2998 = sst [smem:[#allocation12_spill]] %s2964_s4 }
   0x6   :  { %22 = vsyncpa [#allocation3], 0 }
   0x7   :  { %24 = vsyncpa [#allocation3 + $0x1], 0  ;;  %s2533_s21 = smov 0   ;;  %s2535_s22 = smov 0  }
   0x8   :  { %s2537_s23 = smov 0   ;;  %s2539_s24 = smov 0  }
   0x9 LB: > { %2999 = sst [smem:[#allocation5_spill]] %s2425_s23  ;;  %s2554_s25 = sadd.s32 4294967295, %s2429_s24   ;;  %s2429_s24 = sphi %s2539_s24, %s3025_s24   ;;  %s2425_s23 = sphi %s2537_s23, %s3027_s23   ;;  %s2421_s22 = sphi %s2535_s22, %s3029_s22   ;;  %s2417_s21 = sphi %s2533_s21, %s3028_s21  }
   0xa   : > { %s2016_s26 = sadd.s32 4294967294, %s2429_s24   ;;  %s2558_s27 = sadd.s32 1, %s2429_s24  }
   0xb   : > { %3000 = sst [smem:[#allocation6_spill]] %s2558_s27  ;;  %s357_s28 = sadd.s32 1, %s2425_s23 }
   0xc   : > { %s354_s29 = ssub.s32 %s2429_s24, %s2558_s27  ;;  %p367_p0 = scmp.ne.s32.totalorder %s2425_s23, %s2421_s22 }
   0xd   : > { %p355_p1 = scmp.eq.s32.totalorder %s354_s29, 0  ;;  %p368_p2 = scmp.eq.s32.totalorder %s2554_s25, 1 }
   0xe   : > { %p373_p3 = scmp.ne.s32.totalorder %s2421_s22, %s2417_s21  ;;  %p374_p4 = scmp.eq.s32.totalorder %s2016_s26, 1 }
   0xf   : > { %s2569_s30 = scalar_select %p355_p1, %s2425_s23, %s357_s28  }
  0x10   : > { %p2571_p5 = por %p368_p2, %p367_p0  ;;  %p2575_p6 = por %p374_p4, %p373_p3 }
  0x11   : > { %3001 = sst [smem:[#allocation7_spill]] %s2569_s30  ;;  %p2019_p7 = scmp.ge.s32.totalorder %s2429_s24, 1 }
  0x12   : > { %p467_p8 = scmp.lt.s32.totalorder %s2429_s24, 3 }
  0x14   : > { %p468_p9 = pnand %p2019_p7, %p467_p8 }
  0x15   : > { %p521_p10 = scmp.lt.s32.totalorder (!%p468_p9), %s2554_s25, 1  ;;  %s3004_s28 = sld [smem:[#allocation8_spill]] (!%p468_p9) }
  0x16   : > { %471 = sbr.rel (%p468_p9) target bundleno = 4419 (0x1143), region = 80  ;;  %s3005_s3 = sld [smem:[#allocation11_spill]] (!%p468_p9) }
  0x17   : > { %s3006_s1 = sld [smem:[#allocation9_spill]] (!%p468_p9)  ;;  %s2987_s30 = smov (!%p468_p9), 88  }
  0x18   : > { %s3007_s2 = sld [smem:[#allocation10_spill]] (!%p468_p9)  ;;  %s2984_s20 = smov (!%p468_p9), 64  }
  0x19   : > { %s2978_s26 = smov (!%p468_p9), 112   ;;  %s3010_s4 = sld [smem:[#allocation12_spill]] (!%p468_p9) }
  0x1a   : > { %s3011_s23 = smov (!%p468_p9), 120   ;;  %s3017_s27 = smov (!%p468_p9), 80  }
  0x1b   : > { %s2583_s18 = scalar_select %p521_p10, %s2554_s25, 1  ;;  %vm539_vm0 = vcmask 261120   ;;  %v2431_v4 = vmov 32.0   ;;  %vm615_vm5 = vcmask 64512   ;;  %v532_v42 = vlaneseq }
  0x1c   : > { %2319 = vrcp.f32 %v2431_v4  ;;  %v2218_v10 = vld [vmem:[%s3005_s3 + $0x8] sm:$0xff]  ;;  %v2217_v12 = vld [vmem:[%s3005_s3] sm:$0xff] }
  0x1d   : > { %s2021_s19 = sshll.u32 %s2583_s18, 3  ;;  %605 = vmatpush.bf16.msra.mxu0 %v2218_v10  ;;  %v2303_v27 = vld [vmem:[%s3006_s1] ss:$0 sm:$0xff]  ;;  %v533_v43 = vshrl.u32 %v532_v42, 7  ;;  %v535_v44 = vand.u32 127, %v532_v42 }
  0x1e   : > { %s524_s29 = scalar_lea.vmem %s3004_s28, %s2021_s19  ;;  %v2304_v30 = vld [vmem:[%s3007_s2] ss:$0 sm:$0xff]  ;;  %s2977_s28 = smov 120  }
  0x1f   : > { %v2589_v0 = vld [vmem:[%s524_s29] sm:$0xff]  ;;  %s2986_s29 = smov 96   ;;  %s2980_s19 = smov 80   ;;  %vm2640_vm6 = vcmp.le.s32.totalorder %v535_v44, %v533_v43 }
  0x20   : > { %v540_v1 = vsel %vm539_vm0, %v2589_v0, 0.0  ;;  %v551_v2 = vmul.f32 %v2589_v0, %v2589_v0 }
  0x21   : > { %541 = vadd.xlane.f32.xlu0 %v540_v1  ;;  %606 = vmatpush.bf16.msra.mxu0 %v2217_v12 }
  0x22   : > { %v552_v3 = vsel %vm539_vm0, %v551_v2, 0.0  ;;  %v2320_v5 = vpop.eup %2319 }
  0x23   : > { %v544_v6 = vmul.f32 32.0, %v2320_v5  ;;  %vm548_vm1 = vweird.f32 %v2320_v5 }
  0x25   : > { %v545_v7 = vsub.f32 1.0, %v544_v6 }
  0x27   : > { %v546_v8 = vmul.f32 %v2320_v5, %v545_v7 }
  0x29   : > { %553 = vadd.xlane.f32.xlu0 %v552_v3  ;;  %v547_v9 = vadd.f32 %v2320_v5, %v546_v8 }
  0x2b   : > { %v2602_v13 = vsel %vm548_vm1, %v2320_v5, %v547_v9 }
  0x94   : > { %v542_v11 = vpop.xlane.xlu0 %541 }
  0x95   : > { %v550_v14 = vmul.f32 %v2602_v13, %v542_v11 }
  0x97   : > { %v556_v16 = vmul.f32 %v550_v14, %v550_v14  ;;  %v558_v26 = vsub.f32 %v2589_v0, %v550_v14 }
  0x9c   : > { %v554_v15 = vpop.xlane.xlu0 %553 }
  0x9d   : > { %v555_v17 = vmul.f32 %v554_v15, %v2602_v13 }
  0x9f   : > { %v557_v18 = vsub.f32 %v555_v17, %v556_v16 }
  0xa1   : > { %v559_v19 = vadd.f32 1e-05, %v557_v18 }
  0xa3   : > { %2321 = vrsqrt.f32 %v559_v19  ;;  %vm566_vm3 = vweird.f32 %v559_v19 }
  0xa9   : > { %v2322_v20 = vpop.eup %2321 }
  0xaa   : > { %v561_v21 = vmul.f32 %v2322_v20, %v559_v19  ;;  %vm567_vm2 = vweird.f32 %v2322_v20 }
  0xab   : > { %vm568_vm4 = vmor %vm566_vm3, %vm567_vm2 }
  0xac   : > { %v562_v22 = vmul.f32 %v2322_v20, %v561_v21 }
  0xae   : > { %v563_v23 = vmul.f32 0.5, %v562_v22 }
  0xb0   : > { %v564_v24 = vsub.f32 1.5, %v563_v23 }
  0xb2   : > { %v565_v25 = vmul.f32 %v2322_v20, %v564_v24 }
  0xb4   : > { %v569_v28 = vsel %vm568_vm4, %v2322_v20, %v565_v25 }
  0xb5   : > { %v570_v29 = vmul.f32 %v569_v28, %v558_v26 }
  0xb7   : > { %v574_v31 = vmul.f32 %v2303_v27, %v570_v29 }
  0xb9   : > { %v578_v32 = vadd.f32 %v2304_v30, %v574_v31 }
  0xbb   : > { %v579_v33 = vpack.c.bf16 %v578_v32, %v578_v32 }
  0xbd   : > { %2032 = vmatmul.msk.bf16.vlgmr.msra.gmra.mxu0 %vm539_vm0, %v579_v33 }
 0x13a   : > { %v2614_v34 = vpop.f32.mrf.mxu0 }
 0x13b   : > { %691 = vrot.lane.b32.xlu0 %v2614_v34, %s2977_s28  ;;  %693 = vrot.lane.b32.xlu2 %v2614_v34, %s2987_s30  ;;  %s2985_s28 = smov 72   ;;  %s3012_s30 = smov 88  }
 0x13c   : > { %613 = vrot.lane.b32.xlu1 %v2614_v34, %s2986_s29  ;;  %s3014_s29 = smov 72  }
 0x142   : > { %v610_v35 = vpop.f32.mrf.mxu0 }
 0x143   : > { %772 = vrot.lane.b32.xlu0 %v2614_v34, %s2980_s19  ;;  %665 = vrot.lane.b32.xlu2 %v2614_v34, %s2984_s20  ;;  %s2982_s19 = smov 48   ;;  %s2989_s20 = smov 16  }
 0x14b   : > { %770 = vrot.lane.b32.xlu0 %v2614_v34, %s2978_s26  ;;  %851 = vrot.lane.b32.xlu2 %v2614_v34, %s2985_s28  ;;  %s2979_s26 = smov 104   ;;  %s3013_s28 = smov 96  }
 0x195   : > { %v694_v36 = vpop.permute.xlu2 %693 }
 0x196   : > { %2036 = vmatpush.xpose.msk.msra.mxu3 %vm615_vm5, %v694_v36 }
 0x19d   : > { %v666_v37 = vpop.permute.xlu2 %665 }
 0x1a5   : > { %v852_v38 = vpop.permute.xlu2 %851 }
 0x1a6   : > { %2042 = vmatpush.xpose.msk.msra.mxu2 %vm615_vm5, %v852_v38 }
 0x1ad   : > { %v692_v39 = vpop.permute.xlu0 %691 }
 0x1ae   : > { %v2632_v40 = vpop.permute.xlu1 %613  ;;  %2037 = vmatmul.msk.f32.vlgmr.msra.gmra.mxu3 %vm615_vm5, %v692_v39 }
 0x1af   : > { %2033 = vmatpush.xpose.msk.msra.mxu1 %vm615_vm5, %v2632_v40 }
 0x1b2   : > { %2034 = vmatmul.msk.f32.vlgmr.msra.gmra.mxu1 %vm615_vm5, %v2614_v34 }
 0x1b3   : > { %686 = vmatpush.msrb.mxu1 %v666_v37 }
 0x1b5   : > { %v773_v41 = vpop.permute.xlu0 %772 }
 0x1b6   : > { %2039 = vmatpush.xpose.msk.msra.mxu1 %vm615_vm5, %v773_v41 }
 0x1bd   : > { %v771_v12 = vpop.permute.xlu0 %770 }
 0x22f   : > { %v637_v46 = vpop.f32.mrf.mxu1 }
 0x230   : > { %v640_v47 = vsel %vm2640_vm6, %v637_v46, -1e+38 }
 0x231   : > { %v641_v48 = vsel %vm615_vm5, %v640_v47, -inf  ;;  %v716_v49 = vpop.f32.mrf.mxu3 }
 0x232   : > { %642 = vmax.xlane.f32.xlu1 %v641_v48  ;;  %v719_v50 = vsel %vm2640_vm6, %v716_v49, -1e+38 }
 0x233   : > { %v720_v51 = vsel %vm615_vm5, %v719_v50, -inf }
 0x23a   : > { %721 = vmax.xlane.f32.xlu1 %v720_v51 }
 0x2a5   : > { %v643_v52 = vpop.xlane.xlu1 %642 }
 0x2a6   : > { %v644_v53 = vsub.f32 %v640_v47, %v643_v52 }
 0x2a8   : > { %v645_v54 = vmul.f32 1.442695, %v644_v53 }
 0x2aa   : > { %2323 = vpow2.f32 %v645_v54 }
 0x2ad   : > { %v722_v55 = vpop.xlane.xlu1 %721 }
 0x2ae   : > { %v723_v56 = vsub.f32 %v719_v50, %v722_v55 }
 0x2b0   : > { %v2324_v57 = vpop.eup %2323  ;;  %v724_v58 = vmul.f32 1.442695, %v723_v56 }
 0x2b1   : > { %v647_v59 = vsel %vm615_vm5, %v2324_v57, 0.0 }
 0x2b2   : > { %2325 = vpow2.f32 %v724_v58  ;;  %648 = vadd.xlane.f32.xlu2 %v647_v59 }
 0x2b8   : > { %v2651_v60 = vpop.eup %2325 }
 0x2b9   : > { %v726_v61 = vsel %vm615_vm5, %v2651_v60, 0.0 }
 0x2ba   : > { %727 = vadd.xlane.f32.xlu1 %v726_v61 }
 0x2ca   : > { %849 = vrot.lane.b32.xlu2 %v2614_v34, %s2979_s26  ;;  %s2981_s26 = smov 40  }
 0x325   : > { %v649_v62 = vpop.xlane.xlu2 %648 }
 0x326   : > { %2327 = vrcp.f32 %v649_v62  ;;  %v661_v4 = vand.u32 2147483648, %v649_v62  ;;  %v659_v6 = vand.u32 2147483647, %v649_v62  ;;  %vm655_vm8 = vweird.f32 %v649_v62 }
 0x328   : > { %v662_v8 = vor.u32 1.1754944e-38, %v661_v4  ;;  %vm660_vm10 = vcmp.eq.f32.partialorder %v659_v6, 8.507059e+37 }
 0x32c   : > { %v2328_v63 = vpop.eup %2327 }
 0x32d   : > { %v651_v1 = vmul.f32 %v2328_v63, %v649_v62  ;;  %v850_v2 = vpop.permute.xlu2 %849  ;;  %vm656_vm7 = vweird.f32 %v2328_v63  ;;  %v728_v32 = vpop.xlane.xlu1 %727 }
 0x32e   : > { %2043 = vmatmul.msk.f32.vlgmr.msra.gmra.mxu2 %vm615_vm5, %v850_v2  ;;  %vm657_vm9 = vmor %vm655_vm8, %vm656_vm7  ;;  %vm734_vm1 = vweird.f32 %v728_v32  ;;  %v738_v58 = vand.u32 2147483647, %v728_v32 }
 0x32f   : > { %v652_v3 = vsub.f32 1.0, %v651_v1 }
 0x330   : > { %vm739_vm3 = vcmp.eq.f32.partialorder %v738_v58, 8.507059e+37  ;;  %v2308_v58 = vld [vmem:[%s2969_s9] ss:$0 sm:$0xff] }
 0x331   : > { %v653_v5 = vmul.f32 %v2328_v63, %v652_v3 }
 0x333   : > { %v654_v7 = vadd.f32 %v2328_v63, %v653_v5 }
 0x335   : > { %v658_v9 = vsel %vm657_vm9, %v2328_v63, %v654_v7 }
 0x336   : > { %v663_v10 = vsel %vm660_vm10, %v662_v8, %v658_v9  ;;  %vm941_vm10 = vcmask 130048  }
 0x337   : > { %v664_v11 = vmul.f32 %v2324_v57, %v663_v10  ;;  %v740_v57 = vand.u32 2147483648, %v728_v32 }
 0x339   : > { %2035 = vmatmul.msk.f32.vlgmr.msrb.gmra.mxu1 %vm615_vm5, %v664_v11  ;;  %v741_v62 = vor.u32 1.1754944e-38, %v740_v57  ;;  %v2229_v57 = vld [vmem:[%s2970_s10 + $0x30] sm:$0xff] }
 0x341   : > { %2040 = vmatmul.msk.f32.vlgmr.msra.gmra.mxu1 %vm615_vm5, %v771_v12 }
 0x3b1   : > { %v874_v14 = vpop.f32.mrf.mxu2 }
 0x3b2   : > { %v877_v15 = vsel %vm2640_vm6, %v874_v14, -1e+38 }
 0x3b3   : > { %v878_v16 = vsel %vm615_vm5, %v877_v15, -inf }
 0x3b4   : > { %879 = vmax.xlane.f32.xlu2 %v878_v16 }
 0x3b6   : > { %v2663_v17 = vpop.f32.mrf.mxu1 }
 0x3be   : > { %v795_v18 = vpop.f32.mrf.mxu1 }
 0x3bf   : > { %v798_v19 = vsel %vm2640_vm6, %v795_v18, -1e+38 }
 0x3c0   : > { %v799_v20 = vsel %vm615_vm5, %v798_v19, -inf }
 0x3c1   : > { %800 = vmax.xlane.f32.xlu0 %v799_v20 }
 0x3cc   : > { %902 = vrot.lane.b32.xlu2 %v2614_v34, %s2981_s26  ;;  %s2983_s26 = smov 56  }
 0x3d5   : > { %823 = vrot.lane.b32.xlu0 %v2614_v34, %s2982_s19  ;;  %s2991_s19 = smov 8  }
 0x427   : > { %v880_v21 = vpop.xlane.xlu2 %879 }
 0x428   : > { %v881_v22 = vsub.f32 %v877_v15, %v880_v21  ;;  %v2219_v15 = vld [vmem:[%s3010_s4] sm:$0xff] }
 0x42a   : > { %v882_v23 = vmul.f32 1.442695, %v881_v22 }
 0x42c   : > { %2329 = vpow2.f32 %v882_v23 }
 0x42f   : > { %v903_v24 = vpop.permute.xlu2 %902 }
 0x430   : > { %923 = vmatpush.msrb.mxu1 %v903_v24  ;;  %v2305_v24 = vld [vmem:[%s2965_s5] ss:$0 sm:$0xff] }
 0x432   : > { %v2330_v25 = vpop.eup %2329 }
 0x433   : > { %v884_v26 = vsel %vm615_vm5, %v2330_v25, 0.0 }
 0x434   : > { %v801_v27 = vpop.xlane.xlu0 %800  ;;  %885 = vadd.xlane.f32.xlu1 %v884_v26 }
 0x435   : > { %v802_v28 = vsub.f32 %v798_v19, %v801_v27 }
 0x437   : > { %v803_v29 = vmul.f32 1.442695, %v802_v28 }
 0x439   : > { %2331 = vpow2.f32 %v803_v29 }
 0x43f   : > { %v2332_v30 = vpop.eup %2331 }
 0x440   : > { %v805_v31 = vsel %vm615_vm5, %v2332_v30, 0.0 }
 0x441   : > { %806 = vadd.xlane.f32.xlu1 %v805_v31  ;;  %v2222_v31 = vld [vmem:[%s2968_s8 + $0x8] sm:$0xff] }
 0x442   : > { %1048 = vmatpush.bf16.msrb.mxu0 %v2222_v31 }
 0x447   : > { %v824_v6 = vpop.permute.xlu0 %823 }
 0x45a   : > { %744 = vrot.lane.b32.xlu1 %v2614_v34, %s2983_s26  ;;  %s2990_s26 = smov 24  }
 0x4a7   : > { %v886_v33 = vpop.xlane.xlu1 %885 }
 0x4a8   : > { %2333 = vrcp.f32 %v886_v33  ;;  %v898_v38 = vand.u32 2147483648, %v886_v33  ;;  %v896_v42 = vand.u32 2147483647, %v886_v33  ;;  %vm892_vm12 = vweird.f32 %v886_v33 }
 0x4a9   : > { %2335 = vrcp.f32 %v728_v32 }
 0x4aa   : > { %v899_v47 = vor.u32 1.1754944e-38, %v898_v38  ;;  %vm897_vm14 = vcmp.eq.f32.partialorder %v896_v42, 8.507059e+37 }
 0x4ae   : > { %v2334_v35 = vpop.eup %2333 }
 0x4af   : > { %v888_v36 = vmul.f32 %v2334_v35, %v886_v33  ;;  %v2336_v39 = vpop.eup %2335  ;;  %vm893_vm11 = vweird.f32 %v2334_v35 }
 0x4b0   : > { %v730_v46 = vmul.f32 %v2336_v39, %v728_v32  ;;  %vm894_vm13 = vmor %vm892_vm12, %vm893_vm11  ;;  %vm735_vm15 = vweird.f32 %v2336_v39  ;;  %vm943_vm11 = vcmask 195584  }
 0x4b1   : > { %v889_v37 = vsub.f32 1.0, %v888_v36  ;;  %vm736_vm2 = vmor %vm734_vm1, %vm735_vm15 }
 0x4b2   : > { %v731_v51 = vsub.f32 1.0, %v730_v46 }
 0x4b3   : > { %v890_v41 = vmul.f32 %v2334_v35, %v889_v37 }
 0x4b4   : > { %v807_v43 = vpop.xlane.xlu1 %806  ;;  %v732_v53 = vmul.f32 %v2336_v39, %v731_v51 }
 0x4b5   : > { %v891_v44 = vadd.f32 %v2334_v35, %v890_v41  ;;  %2337 = vrcp.f32 %v807_v43  ;;  %v819_v2 = vand.u32 2147483648, %v807_v43  ;;  %vm813_vm7 = vweird.f32 %v807_v43 }
 0x4b6   : > { %v733_v55 = vadd.f32 %v2336_v39, %v732_v53  ;;  %v817_v3 = vand.u32 2147483647, %v807_v43 }
 0x4b7   : > { %v895_v48 = vsel %vm894_vm13, %v2334_v35, %v891_v44  ;;  %v820_v8 = vor.u32 1.1754944e-38, %v819_v2 }
 0x4b8   : > { %v900_v49 = vsel %vm897_vm14, %v899_v47, %v895_v48  ;;  %v737_v61 = vsel %vm736_vm2, %v2336_v39, %v733_v55  ;;  %vm818_vm9 = vcmp.eq.f32.partialorder %v817_v3, 8.507059e+37 }
 0x4b9   : > { %v901_v50 = vmul.f32 %v2330_v25, %v900_v49  ;;  %v742_v63 = vsel %vm739_vm3, %v741_v62, %v737_v61  ;;  %v2306_v49 = vld [vmem:[%s2966_s6] ss:$0 sm:$0xff]  ;;  %v2228_v61 = vld [vmem:[%s2970_s10 + $0x28] sm:$0xff] }
 0x4ba   : > { %v743_v5 = vmul.f32 %v2651_v60, %v742_v63  ;;  %v2220_v60 = vld [vmem:[%s3010_s4 + $0x8] sm:$0xff] }
 0x4bb   : > { %v2338_v52 = vpop.eup %2337  ;;  %2044 = vmatmul.msk.f32.vlgmr.msrb.gmra.mxu1 %vm615_vm5, %v901_v50 }
 0x4bc   : > { %v809_v54 = vmul.f32 %v2338_v52, %v807_v43  ;;  %vm814_vm4 = vweird.f32 %v2338_v52 }
 0x4bd   : > { %vm815_vm8 = vmor %vm813_vm7, %vm814_vm4 }
 0x4be   : > { %v810_v56 = vsub.f32 1.0, %v809_v54 }
 0x4c0   : > { %v811_v59 = vmul.f32 %v2338_v52, %v810_v56  ;;  %v2230_v56 = vld [vmem:[%s2970_s10 + $0x38] sm:$0xff] }
 0x4c1   : > { %1164 = vmatpush.bf16.msrb.mxu2 %v2230_v56 }
 0x4c2   : > { %v812_v1 = vadd.f32 %v2338_v52, %v811_v59 }
 0x4c4   : > { %v816_v7 = vsel %vm815_vm8, %v2338_v52, %v812_v1  ;;  %v2307_v52 = vld [vmem:[%s2967_s7] ss:$0 sm:$0xff] }
 0x4c5   : > { %v821_v9 = vsel %vm818_vm9, %v820_v8, %v816_v7  ;;  %1165 = vmatpush.bf16.msrb.mxu2 %v2229_v57  ;;  %v2227_v1 = vld [vmem:[%s2970_s10 + $0x20] sm:$0xff]  ;;  %v2232_v57 = vld [vmem:[%s3005_s3 + $0x18] sm:$0xff] }
 0x4c6   : > { %v822_v10 = vmul.f32 %v2332_v30, %v821_v9  ;;  %1246 = vmatpush.bf16.msra.mxu1 %v2232_v57 }
 0x4c9   : > { %1166 = vmatpush.bf16.msrb.mxu2 %v2228_v61 }
 0x4cc   : > { %v745_v4 = vpop.permute.xlu1 %744 }
 0x4cd   : > { %765 = vmatpush.msrb.mxu3 %v745_v4  ;;  %1167 = vmatpush.bf16.msrb.mxu2 %v2227_v1 }
 0x4ce   : > { %2038 = vmatmul.msk.f32.vlgmr.msrb.gmra.mxu3 %vm615_vm5, %v743_v5  ;;  %v2226_v5 = vld [vmem:[%s2970_s10 + $0x18] sm:$0xff] }
 0x4cf   : > { %844 = vmatpush.msra.mxu3 %v824_v6 }
 0x4d1   : > { %971 = vmatpush.bf16.msrb.mxu3 %v2220_v60  ;;  %1168 = vmatpush.bf16.msrb.mxu2 %v2226_v5 }
 0x4d5   : > { %972 = vmatpush.bf16.msrb.mxu3 %v2219_v15 }
 0x4d6   : > { %2041 = vmatmul.msk.f32.vlgmr.msra.gmra.mxu3 %vm615_vm5, %v822_v10  ;;  %v2225_v10 = vld [vmem:[%s2970_s10 + $0x10] sm:$0xff] }
 0x4d7   : > { %1169 = vmatpush.bf16.msrb.mxu2 %v2225_v10  ;;  %v2310_v10 = vld [vmem:[%s3006_s1 + $0x1] ss:$0 sm:$0xff] }
 0x538   : > { %v925_v12 = vpop.f32.mrf.mxu1 }
 0x551   : > { %v767_v11 = vpop.f32.mrf.mxu3 }
 0x552   : > { %929 = vrot.lane.b32.xlu1 %v767_v11, %s2991_s19  ;;  %s3018_s19 = smov 112  }
 0x559   : > { %v846_v14 = vpop.f32.mrf.mxu3 }
 0x55a   : > { %937 = vrot.lane.b32.xlu1 %v925_v12, %s2990_s26  ;;  %933 = vrot.lane.b32.xlu0 %v846_v14, %s2989_s20  ;;  %v2224_v14 = vld [vmem:[%s2970_s10 + $0x8] sm:$0xff]  ;;  %s3015_s20 = smov 64   ;;  %s3016_s26 = smov 56  }
 0x55b   : > { %1170 = vmatpush.bf16.msrb.mxu2 %v2224_v14  ;;  %v2311_v14 = vld [vmem:[%s3007_s2 + $0x1] ss:$0 sm:$0xff] }
 0x5c4   : > { %v930_v16 = vpop.permute.xlu1 %929 }
 0x5c5   : > { %v940_v18 = vsel %vm615_vm5, %v2663_v17, %v930_v16 }
 0x5cc   : > { %v938_v19 = vpop.permute.xlu1 %937  ;;  %v934_v20 = vpop.permute.xlu0 %933 }
 0x5cd   : > { %v942_v21 = vsel %vm941_vm10, %v940_v18, %v934_v20  ;;  %v2223_v18 = vld [vmem:[%s2970_s10] sm:$0xff] }
 0x5ce   : > { %v944_v22 = vsel %vm943_vm11, %v942_v21, %v938_v19  ;;  %1171 = vmatpush.bf16.msrb.mxu2 %v2223_v18 }
 0x5cf   : > { %v945_v23 = vpack.c.bf16 %v944_v22, %v944_v22 }
 0x5d1   : > { %2053 = vmatmul.msk.bf16.vlgmr.msrb.gmra.mxu3 %vm539_vm0, %v945_v23 }
 0x654   : > { %v974_v25 = vpop.f32.mrf.mxu3 }
 0x655   : > { %v978_v26 = vadd.f32 %v974_v25, %v2589_v0  ;;  %v2221_v0 = vld [vmem:[%s2968_s8] sm:$0xff] }
 0x656   : > { %1049 = vmatpush.bf16.msrb.mxu0 %v2221_v0 }
 0x657   : > { %v2698_v27 = vadd.f32 %v2305_v24, %v978_v26 }
 0x659   : > { %v986_v17 = vsel %vm539_vm0, %v2698_v27, 0.0  ;;  %v990_v28 = vmul.f32 %v2698_v27, %v2698_v27 }
 0x65a   : > { %987 = vadd.xlane.f32.xlu2 %v986_v17 }
 0x65b   : > { %v991_v29 = vsel %vm539_vm0, %v990_v28, 0.0 }
 0x65c   : > { %992 = vadd.xlane.f32.xlu0 %v991_v29  ;;  %v976_v30 = vpop.f32.mrf.mxu3 }
 0x6cd   : > { %v988_v32 = vpop.xlane.xlu2 %987 }
 0x6ce   : > { %v989_v33 = vmul.f32 %v988_v32, %v2602_v13 }
 0x6cf   : > { %v993_v35 = vpop.xlane.xlu0 %992 }
 0x6d0   : > { %v995_v36 = vmul.f32 %v989_v33, %v989_v33  ;;  %v994_v37 = vmul.f32 %v993_v35, %v2602_v13  ;;  %v997_v48 = vsub.f32 %v2698_v27, %v989_v33 }
 0x6d2   : > { %v996_v38 = vsub.f32 %v994_v37, %v995_v36 }
 0x6d4   : > { %v998_v39 = vadd.f32 1e-05, %v996_v38 }
 0x6d6   : > { %2339 = vrsqrt.f32 %v998_v39  ;;  %vm1005_vm13 = vweird.f32 %v998_v39 }
 0x6dc   : > { %v2340_v41 = vpop.eup %2339 }
 0x6dd   : > { %v1000_v42 = vmul.f32 %v2340_v41, %v998_v39  ;;  %vm1006_vm12 = vweird.f32 %v2340_v41 }
 0x6de   : > { %vm1007_vm14 = vmor %vm1005_vm13, %vm1006_vm12 }
 0x6df   : > { %v1001_v43 = vmul.f32 %v2340_v41, %v1000_v42 }
 0x6e1   : > { %v1002_v44 = vmul.f32 0.5, %v1001_v43 }
 0x6e3   : > { %v1003_v46 = vsub.f32 1.5, %v1002_v44 }
 0x6e5   : > { %v1004_v47 = vmul.f32 %v2340_v41, %v1003_v46 }
 0x6e7   : > { %v1008_v50 = vsel %vm1007_vm14, %v2340_v41, %v1004_v47 }
 0x6e8   : > { %v1009_v51 = vmul.f32 %v1008_v50, %v997_v48 }
 0x6ea   : > { %v1013_v53 = vmul.f32 %v2306_v49, %v1009_v51  ;;  %v2309_v49 = vld [vmem:[%s2971_s11] ss:$0 sm:$0xff] }
 0x6ec   : > { %v1017_v54 = vadd.f32 %v2307_v52, %v1013_v53 }
 0x6ee   : > { %v1018_v55 = vpack.c.bf16 %v1017_v54, %v1017_v54 }
 0x6f0   : > { %2062 = vmatmul.msk.bf16.vlgmr.msrb.gmra.mxu0 %vm539_vm0, %v1018_v55 }
 0x76d   : > { %v1051_v59 = vpop.f32.mrf.mxu0 }
 0x76e   : > { %v1052_v62 = vadd.f32 %v2308_v58, %v1051_v59 }
 0x770   : > { %v1056_v63 = vmul.f32 0.70710677, %v1052_v62  ;;  %v1055_v44 = vmul.f32 0.5, %v1052_v62 }
 0x772   : > { %v1057_v2 = vmul.f32 %v1056_v63, %v1056_v63 }
 0x774   : > { %v1058_v3 = vmin.f32 %v1057_v2, 16.0 }
 0x775   : > { %v1053_v4 = vpop.f32.mrf.mxu0 }
 0x776   : > { %v1059_v6 = vmul.f32 2.1237322e-06, %v1058_v3  ;;  %v1070_v7 = vmul.f32 3.8918573e-05, %v1058_v3 }
 0x778   : > { %v1060_v8 = vadd.f32 0.00028619796, %v1059_v6  ;;  %v1071_v9 = vadd.f32 0.001143296, %v1070_v7 }
 0x77a   : > { %v1061_v11 = vmul.f32 %v1060_v8, %v1058_v3  ;;  %v1072_v12 = vmul.f32 %v1071_v9, %v1058_v3 }
 0x77c   : > { %v1073_v60 = vadd.f32 0.014752088, %v1072_v12  ;;  %v1062_v15 = vadd.f32 0.0036580483, %v1061_v11 }
 0x77e   : > { %v1074_v16 = vmul.f32 %v1073_v60, %v1058_v3  ;;  %v1063_v20 = vmul.f32 %v1062_v15, %v1058_v3 }
 0x780   : > { %v1075_v19 = vadd.f32 0.112945676, %v1074_v16  ;;  %v1064_v23 = vadd.f32 0.05243302, %v1063_v20 }
 0x782   : > { %v1076_v21 = vmul.f32 %v1075_v19, %v1058_v3  ;;  %v1065_v26 = vmul.f32 %v1064_v23, %v1058_v3 }
 0x784   : > { %v1077_v22 = vadd.f32 0.4994258, %v1076_v21  ;;  %v1066_v17 = vadd.f32 0.18741608, %v1065_v26 }
 0x786   : > { %v1078_v24 = vmul.f32 %v1077_v22, %v1058_v3  ;;  %v1067_v29 = vmul.f32 %v1066_v17, %v1058_v3 }
 0x788   : > { %v1079_v25 = vadd.f32 1.0, %v1078_v24  ;;  %v1068_v32 = vadd.f32 1.1283791, %v1067_v29 }
 0x78a   : > { %2341 = vrcp.f32 %v1079_v25  ;;  %v1091_v0 = vand.u32 2147483648, %v1079_v25  ;;  %v1089_v35 = vand.u32 2147483647, %v1079_v25  ;;  %vm1085_vm1 = vweird.f32 %v1079_v25 }
 0x78b   : > { %v1069_v38 = vmul.f32 %v1068_v32, %v1056_v63 }
 0x78c   : > { %v1092_v37 = vor.u32 1.1754944e-38, %v1091_v0  ;;  %vm1090_vm3 = vcmp.eq.f32.partialorder %v1089_v35, 8.507059e+37 }
 0x790   : > { %v2342_v28 = vpop.eup %2341 }
 0x791   : > { %v1081_v30 = vmul.f32 %v2342_v28, %v1079_v25  ;;  %vm1086_vm15 = vweird.f32 %v2342_v28 }
 0x792   : > { %vm1087_vm2 = vmor %vm1085_vm1, %vm1086_vm15 }
 0x793   : > { %v1082_v31 = vsub.f32 1.0, %v1081_v30 }
 0x795   : > { %v1083_v33 = vmul.f32 %v2342_v28, %v1082_v31 }
 0x797   : > { %v1084_v36 = vadd.f32 %v2342_v28, %v1083_v33 }
 0x799   : > { %v1088_v39 = vsel %vm1087_vm2, %v2342_v28, %v1084_v36 }
 0x79a   : > { %v1093_v41 = vsel %vm1090_vm3, %v1092_v37, %v1088_v39 }
 0x79b   : > { %v1094_v42 = vmul.f32 %v1093_v41, %v1069_v38 }
 0x79d   : > { %v2063_v43 = vclamps-f32 %v1094_v42, 1.0 }
 0x79f   : > { %v1097_v46 = vadd.f32 1.0, %v2063_v43 }
 0x7a1   : > { %v1098_v47 = vmul.f32 %v1097_v46, %v1055_v44 }
 0x7a3   : > { %v1099_v48 = vpack.c.bf16 %v1098_v47, %v1098_v47 }
 0x7a5   : > { %1172 = vmatmul.bf16.vlgmr.msrb.gmra.mxu2 %v1099_v48 }
 0x828   : > { %v1173_v50 = vpop.f32.mrf.mxu2 }
 0x829   : > { %v1177_v51 = vadd.f32 %v1173_v50, %v2698_v27  ;;  %v2231_v27 = vld [vmem:[%s3005_s3 + $0x10] sm:$0xff] }
 0x82a   : > { %1247 = vmatpush.bf16.msra.mxu1 %v2231_v27 }
 0x82b   : > { %v2752_v52 = vadd.f32 %v2309_v49, %v1177_v51 }
 0x82d   : > { %v1187_v53 = vsel %vm539_vm0, %v2752_v52, 0.0  ;;  %v1191_v54 = vmul.f32 %v2752_v52, %v2752_v52 }
 0x82e   : > { %1188 = vadd.xlane.f32.xlu1 %v1187_v53 }
 0x82f   : > { %v1192_v55 = vsel %vm539_vm0, %v1191_v54, 0.0 }
 0x830   : > { %1193 = vadd.xlane.f32.xlu2 %v1192_v55  ;;  %v1175_v56 = vpop.f32.mrf.mxu2 }
 0x8a1   : > { %v1189_v58 = vpop.xlane.xlu1 %1188 }
 0x8a2   : > { %v1190_v59 = vmul.f32 %v1189_v58, %v2602_v13 }
 0x8a3   : > { %v1194_v61 = vpop.xlane.xlu2 %1193 }
 0x8a4   : > { %v1196_v62 = vmul.f32 %v1190_v59, %v1190_v59  ;;  %v1195_v63 = vmul.f32 %v1194_v61, %v2602_v13  ;;  %v1198_v9 = vsub.f32 %v2752_v52, %v1190_v59 }
 0x8a6   : > { %v1197_v1 = vsub.f32 %v1195_v63, %v1196_v62 }
 0x8a8   : > { %v1199_v2 = vadd.f32 1e-05, %v1197_v1 }
 0x8aa   : > { %2343 = vrsqrt.f32 %v1199_v2  ;;  %vm1206_vm7 = vweird.f32 %v1199_v2 }
 0x8b0   : > { %v2344_v3 = vpop.eup %2343 }
 0x8b1   : > { %v1201_v4 = vmul.f32 %v2344_v3, %v1199_v2  ;;  %vm1207_vm4 = vweird.f32 %v2344_v3 }
 0x8b2   : > { %vm1208_vm8 = vmor %vm1206_vm7, %vm1207_vm4 }
 0x8b3   : > { %v1202_v5 = vmul.f32 %v2344_v3, %v1201_v4 }
 0x8b5   : > { %v1203_v6 = vmul.f32 0.5, %v1202_v5 }
 0x8b7   : > { %v1204_v7 = vsub.f32 1.5, %v1203_v6 }
 0x8b9   : > { %v1205_v8 = vmul.f32 %v2344_v3, %v1204_v7 }
 0x8bb   : > { %v1209_v11 = vsel %vm1208_vm8, %v2344_v3, %v1205_v8 }
 0x8bc   : > { %v1210_v12 = vmul.f32 %v1209_v11, %v1198_v9 }
 0x8be   : > { %v1214_v60 = vmul.f32 %v2310_v10, %v1210_v12 }
 0x8c0   : > { %v1218_v15 = vadd.f32 %v2311_v14, %v1214_v60 }
 0x8c2   : > { %v1219_v16 = vpack.c.bf16 %v1218_v15, %v1218_v15 }
 0x8c4   : > { %2110 = vmatmul.msk.bf16.vlgmr.msra.gmra.mxu1 %vm539_vm0, %v1219_v16 }
 0x941   : > { %v2775_v18 = vpop.f32.mrf.mxu1 }
 0x942   : > { %1331 = vrot.lane.b32.xlu2 %v2775_v18, %s3011_s23  ;;  %1333 = vrot.lane.b32.xlu1 %v2775_v18, %s3012_s30  ;;  %s3019_s23 = smov 104   ;;  %s3020_s30 = smov 48  }
 0x943   : > { %1254 = vrot.lane.b32.xlu0 %v2775_v18, %s3013_s28  ;;  %s3021_s28 = smov 8  }
 0x949   : > { %v1251_v19 = vpop.f32.mrf.mxu1 }
 0x94a   : > { %1491 = vrot.lane.b32.xlu2 %v2775_v18, %s3014_s29  ;;  %s3022_s29 = smov 40  }
 0x99c   : > { %v1332_v22 = vpop.permute.xlu2 %1331 }
 0x9a4   : > { %v1492_v42 = vpop.permute.xlu2 %1491 }
 0x9b4   : > { %v1334_v20 = vpop.permute.xlu1 %1333 }
 0x9b5   : > { %v1255_v21 = vpop.permute.xlu0 %1254  ;;  %2114 = vmatpush.xpose.msk.msrb.mxu1 %vm615_vm5, %v1334_v20 }
 0x9b6   : > { %2111 = vmatpush.xpose.msk.msra.mxu3 %vm615_vm5, %v1255_v21 }
 0x9b8   : > { %2115 = vmatmul.msk.f32.vlgmr.msrb.gmra.mxu1 %vm615_vm5, %v1332_v22 }
 0x9b9   : > { %2112 = vmatmul.msk.f32.vlgmr.msra.gmra.mxu3 %vm615_vm5, %v2775_v18 }
 0xa35   : > { %v1356_v23 = vpop.f32.mrf.mxu1 }
 0xa36   : > { %v1359_v24 = vsel %vm2640_vm6, %v1356_v23, -1e+38 }
 0xa37   : > { %v1360_v25 = vsel %vm615_vm5, %v1359_v24, -inf }
 0xa38   : > { %1361 = vmax.xlane.f32.xlu0 %v1360_v25 }
 0xa3c   : > { %v1277_v26 = vpop.f32.mrf.mxu3 }
 0xa3d   : > { %v1280_v17 = vsel %vm2640_vm6, %v1277_v26, -1e+38 }
 0xa3e   : > { %v1281_v28 = vsel %vm615_vm5, %v1280_v17, -inf }
 0xa3f   : > { %1282 = vmax.xlane.f32.xlu1 %v1281_v28 }
 0xa4c   : > { %1305 = vrot.lane.b32.xlu0 %v2775_v18, %s3015_s20 }
 0xa58   : > { %1384 = vrot.lane.b32.xlu1 %v2775_v18, %s3016_s26  ;;  %s2387_s26 = scalar_lea.hbm %s2975_s15, 16 }
 0xa60   : > { %1412 = vrot.lane.b32.xlu1 %v2775_v18, %s3017_s27  ;;  %s3023_s27 = smov 24  }
 0xaab   : > { %v1362_v29 = vpop.xlane.xlu0 %1361 }
 0xaac   : > { %v1363_v30 = vsub.f32 %v1359_v24, %v1362_v29 }
 0xaae   : > { %v1364_v31 = vmul.f32 1.442695, %v1363_v30 }
 0xab0   : > { %2345 = vpow2.f32 %v1364_v31 }
 0xab2   : > { %v1283_v0 = vpop.xlane.xlu1 %1282 }
 0xab3   : > { %v1284_v32 = vsub.f32 %v1280_v17, %v1283_v0 }
 0xab5   : > { %v1285_v33 = vmul.f32 1.442695, %v1284_v32 }
 0xab6   : > { %v2346_v35 = vpop.eup %2345 }
 0xab7   : > { %2347 = vpow2.f32 %v1285_v33  ;;  %v1366_v36 = vsel %vm615_vm5, %v2346_v35, 0.0 }
 0xab8   : > { %1367 = vadd.xlane.f32.xlu2 %v1366_v36 }
 0xabd   : > { %v2348_v37 = vpop.eup %2347 }
 0xabe   : > { %v1287_v38 = vsel %vm615_vm5, %v2348_v37, 0.0  ;;  %v1306_v39 = vpop.permute.xlu0 %1305 }
 0xabf   : > { %1288 = vadd.xlane.f32.xlu0 %v1287_v38  ;;  %1326 = vmatpush.msra.mxu0 %v1306_v39 }
 0xaca   : > { %v1385_v41 = vpop.permute.xlu1 %1384 }
 0xacb   : > { %1405 = vmatpush.msrb.mxu3 %v1385_v41 }
 0xacd   : > { %2120 = vmatpush.xpose.msk.msra.mxu3 %vm615_vm5, %v1492_v42 }
 0xad0   : > { %1410 = vrot.lane.b32.xlu2 %v2775_v18, %s3018_s19  ;;  %s3024_s19 = smov 16  }
 0xad2   : > { %v1413_v43 = vpop.permute.xlu1 %1412 }
 0xad3   : > { %1489 = vrot.lane.b32.xlu0 %v2775_v18, %s3019_s23  ;;  %2117 = vmatpush.xpose.msk.msrb.mxu0 %vm615_vm5, %v1413_v43  ;;  %s2446_s23 = smov 32  }
 0xb2b   : > { %v1368_v44 = vpop.xlane.xlu2 %1367 }
 0xb2c   : > { %2349 = vrcp.f32 %v1368_v44  ;;  %v1380_v50 = vand.u32 2147483648, %v1368_v44  ;;  %v1378_v53 = vand.u32 2147483647, %v1368_v44  ;;  %vm1374_vm12 = vweird.f32 %v1368_v44 }
 0xb2e   : > { %v1381_v56 = vor.u32 1.1754944e-38, %v1380_v50  ;;  %vm1379_vm14 = vcmp.eq.f32.partialorder %v1378_v53, 8.507059e+37 }
 0xb32   : > { %v2350_v46 = vpop.eup %2349  ;;  %v1289_v47 = vpop.xlane.xlu0 %1288 }
 0xb33   : > { %v1370_v48 = vmul.f32 %v2350_v46, %v1368_v44  ;;  %2351 = vrcp.f32 %v1289_v47  ;;  %vm1375_vm9 = vweird.f32 %v2350_v46  ;;  %v1301_v61 = vand.u32 2147483648, %v1289_v47  ;;  %v1411_v8 = vpop.permute.xlu2 %1410 }
 0xb34   : > { %vm1376_vm13 = vmor %vm1374_vm12, %vm1375_vm9  ;;  %v1299_v1 = vand.u32 2147483647, %v1289_v47  ;;  %vm1295_vm1 = vweird.f32 %v1289_v47 }
 0xb35   : > { %v1371_v49 = vsub.f32 1.0, %v1370_v48  ;;  %v1302_v3 = vor.u32 1.1754944e-38, %v1301_v61 }
 0xb36   : > { %vm1300_vm3 = vcmp.eq.f32.partialorder %v1299_v1, 8.507059e+37 }
 0xb37   : > { %v1372_v51 = vmul.f32 %v2350_v46, %v1371_v49 }
 0xb39   : > { %v2352_v54 = vpop.eup %2351  ;;  %v1373_v55 = vadd.f32 %v2350_v46, %v1372_v51 }
 0xb3a   : > { %v1291_v57 = vmul.f32 %v2352_v54, %v1289_v47  ;;  %vm1296_vm15 = vweird.f32 %v2352_v54 }
 0xb3b   : > { %v1377_v27 = vsel %vm1376_vm13, %v2350_v46, %v1373_v55  ;;  %vm1297_vm2 = vmor %vm1295_vm1, %vm1296_vm15 }
 0xb3c   : > { %v1382_v58 = vsel %vm1379_vm14, %v1381_v56, %v1377_v27  ;;  %v1292_v59 = vsub.f32 1.0, %v1291_v57  ;;  %v2234_v57 = vld [vmem:[%s3010_s4 + $0x18] sm:$0xff] }
 0xb3d   : > { %v1383_v62 = vmul.f32 %v2346_v35, %v1382_v58 }
 0xb3e   : > { %v1293_v63 = vmul.f32 %v2352_v54, %v1292_v59  ;;  %v2233_v59 = vld [vmem:[%s3010_s4 + $0x10] sm:$0xff] }
 0xb3f   : > { %2116 = vmatmul.msk.f32.vlgmr.msrb.gmra.mxu3 %vm615_vm5, %v1383_v62 }
 0xb40   : > { %v1294_v2 = vadd.f32 %v2352_v54, %v1293_v63 }
 0xb42   : > { %v1298_v4 = vsel %vm1297_vm2, %v2352_v54, %v1294_v2 }
 0xb43   : > { %v1303_v5 = vsel %vm1300_vm3, %v1302_v3, %v1298_v4 }
 0xb44   : > { %v1304_v6 = vmul.f32 %v2348_v37, %v1303_v5  ;;  %v2312_v5 = vld [vmem:[%s2965_s5 + $0x1] ss:$0 sm:$0xff] }
 0xb45   : > { %v1490_v7 = vpop.permute.xlu0 %1489 }
 0xb46   : > { %2113 = vmatmul.msk.f32.vlgmr.msra.gmra.mxu0 %vm615_vm5, %v1304_v6 }
 0xb47   : > { %2121 = vmatmul.msk.f32.vlgmr.msra.gmra.mxu3 %vm615_vm5, %v1490_v7 }
 0xb4e   : > { %2118 = vmatmul.msk.f32.vlgmr.msrb.gmra.mxu0 %vm615_vm5, %v1411_v8 }
 0xbc2   : > { %v1407_v9 = vpop.f32.mrf.mxu3 }
 0xbc3   : > { %v2814_v10 = vpop.f32.mrf.mxu0 }
 0xbca   : > { %v1514_v11 = vpop.f32.mrf.mxu3 }
 0xbcb   : > { %v1435_v12 = vpop.f32.mrf.mxu0  ;;  %v1517_v14 = vsel %vm2640_vm6, %v1514_v11, -1e+38 }
 0xbcc   : > { %v1438_v60 = vsel %vm2640_vm6, %v1435_v12, -1e+38  ;;  %v1518_v15 = vsel %vm615_vm5, %v1517_v14, -inf }
 0xbcd   : > { %v1439_v16 = vsel %vm615_vm5, %v1438_v60, -inf  ;;  %1519 = vmax.xlane.f32.xlu1 %v1518_v15 }
 0xbce   : > { %1440 = vmax.xlane.f32.xlu0 %v1439_v16 }
 0xbe6   : > { %1463 = vrot.lane.b32.xlu1 %v2775_v18, %s3020_s30  ;;  %s2216_s30 = sshll.u32 %s2583_s18, 4 }
 0xc40   : > { %v1520_v19 = vpop.xlane.xlu1 %1519 }
 0xc41   : > { %v1521_v20 = vsub.f32 %v1517_v14, %v1520_v19  ;;  %v1441_v21 = vpop.xlane.xlu0 %1440  ;;  %v2236_v14 = vld [vmem:[%s2968_s8 + $0x18] sm:$0xff] }
 0xc42   : > { %v1442_v22 = vsub.f32 %v1438_v60, %v1441_v21  ;;  %1692 = vmatpush.bf16.msrb.mxu3 %v2236_v14 }
 0xc43   : > { %v1522_v23 = vmul.f32 1.442695, %v1521_v20 }
 0xc44   : > { %v1443_v24 = vmul.f32 1.442695, %v1442_v22 }
 0xc45   : > { %2353 = vpow2.f32 %v1522_v23 }
 0xc46   : > { %2355 = vpow2.f32 %v1443_v24 }
 0xc4b   : > { %v2354_v25 = vpop.eup %2353 }
 0xc4c   : > { %v2356_v45 = vpop.eup %2355  ;;  %v1524_v26 = vsel %vm615_vm5, %v2354_v25, 0.0 }
 0xc4d   : > { %1525 = vadd.xlane.f32.xlu0 %v1524_v26  ;;  %v1445_v17 = vsel %vm615_vm5, %v2356_v45, 0.0 }
 0xc4e   : > { %1446 = vadd.xlane.f32.xlu2 %v1445_v17 }
 0xc58   : > { %v1464_v28 = vpop.permute.xlu1 %1463 }
 0xc59   : > { %1484 = vmatpush.msra.mxu1 %v1464_v28 }
 0xc5b   : > { %1610 = vmatpush.bf16.msrb.mxu1 %v2234_v57 }
 0xc5f   : > { %1611 = vmatpush.bf16.msrb.mxu1 %v2233_v59  ;;  %v2238_v59 = vld [vmem:[%s2970_s10 + $0x48] sm:$0xff] }
 0xc61   : > { %1569 = vrot.lane.b32.xlu0 %v1407_v9, %s3021_s28  ;;  %s511_s28 = sand.u32 1, %s2421_s22  }
 0xc62   : > { %s2020_s20 = sshll.u32 %s511_s28, 3 }
 0xc63   : > { %s513_s1 = scalar_lea.vmem [#allocation2], %s2020_s20 }
 0xc64   : > { %s1926_s18 = sshll.u32 %s513_s1, 4  ;;  %s1927_s18 = int_to_ptr.vmem [resolvable:$true] %s1926_s18 }
 0xc66   : > { %1542 = vrot.lane.b32.xlu2 %v2775_v18, %s3022_s29  ;;  %s2213_s29 = sshll.u32 %s2554_s25, 3 }
 0xcc0   : > { %v1526_v29 = vpop.xlane.xlu0 %1525 }
 0xcc1   : > { %v1447_v30 = vpop.xlane.xlu2 %1446  ;;  %2357 = vrcp.f32 %v1526_v29  ;;  %v1538_v38 = vand.u32 2147483648, %v1526_v29  ;;  %v1536_v42 = vand.u32 2147483647, %v1526_v29  ;;  %vm1532_vm7 = vweird.f32 %v1526_v29 }
 0xcc2   : > { %2359 = vrcp.f32 %v1447_v30  ;;  %v1459_v39 = vand.u32 2147483648, %v1447_v30  ;;  %v1457_v44 = vand.u32 2147483647, %v1447_v30  ;;  %vm1453_vm8 = vweird.f32 %v1447_v30 }
 0xcc3   : > { %v1539_v48 = vor.u32 1.1754944e-38, %v1538_v38  ;;  %vm1537_vm13 = vcmp.eq.f32.partialorder %v1536_v42, 8.507059e+37  ;;  %v2315_v38 = vld [vmem:[%s2969_s9 + $0x1] ss:$0 sm:$0xff] }
 0xcc4   : > { %v1460_v49 = vor.u32 1.1754944e-38, %v1459_v39  ;;  %vm1458_vm14 = vcmp.eq.f32.partialorder %v1457_v44, 8.507059e+37  ;;  %v2241_v44 = vld [vmem:[%s2970_s10 + $0x60] sm:$0xff] }
 0xcc7   : > { %v2358_v31 = vpop.eup %2357 }
 0xcc8   : > { %v2360_v0 = vpop.eup %2359  ;;  %v1528_v32 = vmul.f32 %v2358_v31, %v1526_v29  ;;  %vm1533_vm6 = vweird.f32 %v2358_v31  ;;  %v2313_v29 = vld [vmem:[%s2966_s6 + $0x1] ss:$0 sm:$0xff] }
 0xcc9   : > { %v1449_v33 = vmul.f32 %v2360_v0, %v1447_v30  ;;  %v1543_v35 = vpop.permute.xlu2 %1542  ;;  %vm1454_vm4 = vweird.f32 %v2360_v0  ;;  %vm1534_vm9 = vmor %vm1532_vm7, %vm1533_vm6  ;;  %vm1902_vm6 = vcmask 523264  }
 0xcca   : > { %v1529_v36 = vsub.f32 1.0, %v1528_v32  ;;  %1563 = vmatpush.msra.mxu0 %v1543_v35  ;;  %vm1455_vm12 = vmor %vm1453_vm8, %vm1454_vm4  ;;  %vm1904_vm4 = vcmask 785408  }
 0xccb   : > { %v1450_v37 = vsub.f32 1.0, %v1449_v33 }
 0xccc   : > { %v1530_v41 = vmul.f32 %v2358_v31, %v1529_v36  ;;  %v2244_v36 = vld [vmem:[%s2970_s10 + $0x78] sm:$0xff] }
 0xccd   : > { %v1451_v43 = vmul.f32 %v2360_v0, %v1450_v37  ;;  %1809 = vmatpush.bf16.msra.mxu2 %v2244_v36  ;;  %v2243_v37 = vld [vmem:[%s2970_s10 + $0x70] sm:$0xff] }
 0xcce   : > { %v1531_v46 = vadd.f32 %v2358_v31, %v1530_v41  ;;  %v2242_v41 = vld [vmem:[%s2970_s10 + $0x68] sm:$0xff] }
 0xccf   : > { %v1452_v47 = vadd.f32 %v2360_v0, %v1451_v43 }
 0xcd0   : > { %v1535_v50 = vsel %vm1534_vm9, %v2358_v31, %v1531_v46 }
 0xcd1   : > { %v1456_v51 = vsel %vm1455_vm12, %v2360_v0, %v1452_v47  ;;  %v1540_v53 = vsel %vm1537_vm13, %v1539_v48, %v1535_v50  ;;  %v2314_v0 = vld [vmem:[%s2967_s7 + $0x1] ss:$0 sm:$0xff]  ;;  %1810 = vmatpush.bf16.msra.mxu2 %v2243_v37  ;;  %v2246_v37 = vld [vmem:[%s2974_s14 + $0x8] sm:$0xff] }
 0xcd2   : > { %v1461_v54 = vsel %vm1458_vm14, %v1460_v49, %v1456_v51  ;;  %v1541_v55 = vmul.f32 %v2354_v25, %v1540_v53  ;;  %v2240_v49 = vld [vmem:[%s2970_s10 + $0x58] sm:$0xff]  ;;  %1889 = vmatpush.bf16.msrb.mxu0 %v2246_v37 }
 0xcd3   : > { %v1462_v56 = vmul.f32 %v2356_v45, %v1461_v54  ;;  %v1570_v61 = vpop.permute.xlu0 %1569 }
 0xcd4   : > { %2122 = vmatmul.msk.f32.vlgmr.msra.gmra.mxu0 %vm615_vm5, %v1541_v55  ;;  %v1580_v63 = vsel %vm615_vm5, %v2814_v10, %v1570_v61  ;;  %v2239_v55 = vld [vmem:[%s2970_s10 + $0x50] sm:$0xff] }
 0xcd5   : > { %2119 = vmatmul.msk.f32.vlgmr.msra.gmra.mxu1 %vm615_vm5, %v1462_v56  ;;  %1811 = vmatpush.bf16.msra.mxu2 %v2242_v41 }
 0xcd9   : > { %1812 = vmatpush.bf16.msra.mxu2 %v2241_v44 }
 0xcdd   : > { %1813 = vmatpush.bf16.msra.mxu2 %v2240_v49 }
 0xce1   : > { %1814 = vmatpush.bf16.msra.mxu2 %v2239_v55 }
 0xce5   : > { %1815 = vmatpush.bf16.msra.mxu2 %v2238_v59 }
 0xd51   : > { %v1565_v27 = vpop.f32.mrf.mxu0 }
 0xd52   : > { %v1486_v58 = vpop.f32.mrf.mxu1  ;;  %1577 = vrot.lane.b32.xlu1 %v1565_v27, %s3023_s27  ;;  %s529_s27 = scalar_lea.vmem %s2976_s16, %s2216_s30 }
 0xd53   : > { %1573 = vrot.lane.b32.xlu0 %v1486_v58, %s3024_s19  ;;  %s1924_s19 = scalar_lea.hbm %s2975_s15, %s2213_s29 }
 0xd54   : > { %s1928_s2 = sshll.u32 %s1924_s19, 4  ;;  %s1929_s2 = int_to_ptr.hbm [resolvable:$true] %s1928_s2 }
 0xd55   : > { %s2381_s30 = sshra.s32 %s1929_s2, 4  ;;  %s2382_s30 = int_to_ptr.hbm [resolvable:$true] %s2381_s30 }
 0xd56   : > { %s2383_s3 = scalar_lea.hbm %s2382_s30, 8  ;;  %p2388_p0 = scmp.lt.s32.totalorder %s2382_s30, %s2975_s15 }
 0xd57   : > { %p2384_p11 = scmp.ne.s32.totalorder %s2382_s30, %s2383_s3  ;;  %p2389_p1 = scmp.lt.s32.totalorder %s2387_s26, %s2383_s3 }
 0xd59   : > { %p2385_p12 = pnand %p2384_p11, %p2571_p5  ;;  %p2390_p2 = por %p2389_p1, %p2388_p0 }
 0xd5b   : > { %p2386_p13 = pneg %p2385_p12 }
 0xd5d   : > { %p2391_p3 = pnand %p2390_p2, %p2386_p13 }
 0xdc4   : > { %v1578_v62 = vpop.permute.xlu1 %1577 }
 0xdc5   : > { %v1574_v1 = vpop.permute.xlu0 %1573 }
 0xdc6   : > { %v1581_v2 = vsel %vm941_vm10, %v1580_v63, %v1574_v1  ;;  %v2237_v1 = vld [vmem:[%s2970_s10 + $0x40] sm:$0xff] }
 0xdc7   : > { %v1582_v3 = vsel %vm943_vm11, %v1581_v2, %v1578_v62  ;;  %1816 = vmatpush.bf16.msra.mxu2 %v2237_v1 }
 0xdc8   : > { %v1583_v4 = vpack.c.bf16 %v1582_v3, %v1582_v3 }
 0xdca   : > { %2135 = vmatmul.msk.bf16.vlgmr.msrb.gmra.mxu1 %vm539_vm0, %v1583_v4 }
 0xe47   : > { %v1613_v6 = vpop.f32.mrf.mxu1 }
 0xe48   : > { %v1617_v7 = vadd.f32 %v1613_v6, %v2752_v52  ;;  %v2235_v52 = vld [vmem:[%s2968_s8 + $0x10] sm:$0xff] }
 0xe49   : > { %1693 = vmatpush.bf16.msrb.mxu3 %v2235_v52 }
 0xe4a   : > { %v2848_v8 = vadd.f32 %v2312_v5, %v1617_v7 }
 0xe4c   : > { %v1628_v9 = vsel %vm539_vm0, %v2848_v8, 0.0  ;;  %v1632_v10 = vmul.f32 %v2848_v8, %v2848_v8 }
 0xe4d   : > { %1629 = vadd.xlane.f32.xlu2 %v1628_v9 }
 0xe4e   : > { %v1633_v11 = vsel %vm539_vm0, %v1632_v10, 0.0 }
 0xe4f   : > { %1634 = vadd.xlane.f32.xlu0 %v1633_v11  ;;  %v1615_v12 = vpop.f32.mrf.mxu1 }
 0xec0   : > { %v1630_v60 = vpop.xlane.xlu2 %1629 }
 0xec1   : > { %v1631_v15 = vmul.f32 %v1630_v60, %v2602_v13 }
 0xec2   : > { %v1635_v16 = vpop.xlane.xlu0 %1634 }
 0xec3   : > { %v1637_v19 = vmul.f32 %v1631_v15, %v1631_v15  ;;  %v1636_v20 = vmul.f32 %v1635_v16, %v2602_v13  ;;  %v1639_v28 = vsub.f32 %v2848_v8, %v1631_v15 }
 0xec5   : > { %v1638_v21 = vsub.f32 %v1636_v20, %v1637_v19 }
 0xec7   : > { %v1640_v22 = vadd.f32 1e-05, %v1638_v21 }
 0xec9   : > { %2361 = vrsqrt.f32 %v1640_v22  ;;  %vm1647_vm10 = vweird.f32 %v1640_v22 }
 0xecf   : > { %v2362_v23 = vpop.eup %2361 }
 0xed0   : > { %v1642_v24 = vmul.f32 %v2362_v23, %v1640_v22  ;;  %vm1648_vm5 = vweird.f32 %v2362_v23 }
 0xed1   : > { %vm1649_vm11 = vmor %vm1647_vm10, %vm1648_vm5 }
 0xed2   : > { %v1643_v25 = vmul.f32 %v2362_v23, %v1642_v24 }
 0xed4   : > { %v1644_v45 = vmul.f32 0.5, %v1643_v25 }
 0xed6   : > { %v1645_v26 = vsub.f32 1.5, %v1644_v45 }
 0xed8   : > { %v1646_v17 = vmul.f32 %v2362_v23, %v1645_v26 }
 0xeda   : > { %v1650_v30 = vsel %vm1649_vm11, %v2362_v23, %v1646_v17 }
 0xedb   : > { %v1651_v31 = vmul.f32 %v1650_v30, %v1639_v28 }
 0xedd   : > { %v1655_v32 = vmul.f32 %v2313_v29, %v1651_v31  ;;  %v2316_v29 = vld [vmem:[%s2971_s11 + $0x1] ss:$0 sm:$0xff] }
 0xedf   : > { %v1659_v33 = vadd.f32 %v2314_v0, %v1655_v32 }
 0xee1   : > { %v1660_v35 = vpack.c.bf16 %v1659_v33, %v1659_v33 }
 0xee3   : > { %2152 = vmatmul.msk.bf16.vlgmr.msrb.gmra.mxu3 %vm539_vm0, %v1660_v35 }
 0xf66   : > { %v1695_v39 = vpop.f32.mrf.mxu3 }
 0xf67   : > { %v1696_v42 = vadd.f32 %v2315_v38, %v1695_v39  ;;  %v2447_v38 = vmov 0.0  }
 0xf68   : > { %1907 = vst [vmem:[%s529_s27 + $0x8] sm:$0xff] %v2447_v38 }
 0xf69   : > { %v1700_v43 = vmul.f32 0.70710677, %v1696_v42  ;;  %v1699_v45 = vmul.f32 0.5, %v1696_v42 }
 0xf6b   : > { %v1701_v46 = vmul.f32 %v1700_v43, %v1700_v43 }
 0xf6d   : > { %v1702_v47 = vmin.f32 %v1701_v46, 16.0 }
 0xf6e   : > { %v1697_v48 = vpop.f32.mrf.mxu3 }
 0xf6f   : > { %v1703_v50 = vmul.f32 2.1237322e-06, %v1702_v47  ;;  %v1714_v51 = vmul.f32 3.8918573e-05, %v1702_v47  ;;  %v1901_v48 = vsel %vm539_vm0, %v2632_v40, %v2775_v18  ;;  %v2317_v40 = vld [vmem:[%s2972_s12] ss:$0 sm:$0xff] }
 0xf70   : > { %v1903_v49 = vsel %vm1902_vm6, %v1901_v48, %v2614_v34 }
 0xf71   : > { %v1704_v53 = vadd.f32 0.00028619796, %v1703_v50  ;;  %v1715_v54 = vadd.f32 0.001143296, %v1714_v51 }
 0xf73   : > { %v1705_v56 = vmul.f32 %v1704_v53, %v1702_v47  ;;  %v1716_v57 = vmul.f32 %v1715_v54, %v1702_v47 }
 0xf75   : > { %v1717_v27 = vadd.f32 0.014752088, %v1716_v57  ;;  %v1706_v58 = vadd.f32 0.0036580483, %v1705_v56 }
 0xf77   : > { %v1718_v61 = vmul.f32 %v1717_v27, %v1702_v47  ;;  %v1707_v63 = vmul.f32 %v1706_v58, %v1702_v47  ;;  %v2318_v58 = vld [vmem:[%s2973_s13] ss:$0 sm:$0xff] }
 0xf79   : > { %v1719_v62 = vadd.f32 0.112945676, %v1718_v61  ;;  %v1708_v4 = vadd.f32 0.05243302, %v1707_v63 }
 0xf7b   : > { %v1720_v2 = vmul.f32 %v1719_v62, %v1702_v47  ;;  %v1709_v7 = vmul.f32 %v1708_v4, %v1702_v47 }
 0xf7d   : > { %v1721_v3 = vadd.f32 0.4994258, %v1720_v2  ;;  %v1710_v9 = vadd.f32 0.18741608, %v1709_v7 }
 0xf7f   : > { %v1722_v5 = vmul.f32 %v1721_v3, %v1702_v47  ;;  %v1711_v11 = vmul.f32 %v1710_v9, %v1702_v47 }
 0xf81   : > { %v1723_v6 = vadd.f32 1.0, %v1722_v5  ;;  %v1712_v60 = vadd.f32 1.1283791, %v1711_v11 }
 0xf83   : > { %2363 = vrcp.f32 %v1723_v6  ;;  %v1735_v52 = vand.u32 2147483648, %v1723_v6  ;;  %v1733_v16 = vand.u32 2147483647, %v1723_v6  ;;  %vm1729_vm1 = vweird.f32 %v1723_v6 }
 0xf84   : > { %v1713_v21 = vmul.f32 %v1712_v60, %v1700_v43 }
 0xf85   : > { %v1736_v20 = vor.u32 1.1754944e-38, %v1735_v52  ;;  %vm1734_vm3 = vcmp.eq.f32.partialorder %v1733_v16, 8.507059e+37 }
 0xf89   : > { %v2364_v10 = vpop.eup %2363 }
 0xf8a   : > { %v1725_v12 = vmul.f32 %v2364_v10, %v1723_v6  ;;  %vm1730_vm15 = vweird.f32 %v2364_v10 }
 0xf8b   : > { %vm1731_vm2 = vmor %vm1729_vm1, %vm1730_vm15 }
 0xf8c   : > { %v1726_v14 = vsub.f32 1.0, %v1725_v12 }
 0xf8e   : > { %v1727_v15 = vmul.f32 %v2364_v10, %v1726_v14 }
 0xf90   : > { %v1728_v19 = vadd.f32 %v2364_v10, %v1727_v15 }
 0xf92   : > { %v1732_v22 = vsel %vm1731_vm2, %v2364_v10, %v1728_v19 }
 0xf93   : > { %v1737_v23 = vsel %vm1734_vm3, %v1736_v20, %v1732_v22 }
 0xf94   : > { %v1738_v24 = vmul.f32 %v1737_v23, %v1713_v21 }
 0xf96   : > { %v2153_v25 = vclamps-f32 %v1738_v24, 1.0 }
 0xf98   : > { %v1741_v26 = vadd.f32 1.0, %v2153_v25 }
 0xf9a   : > { %v1742_v17 = vmul.f32 %v1741_v26, %v1699_v45 }
 0xf9c   : > { %v1743_v28 = vpack.c.bf16 %v1742_v17, %v1742_v17 }
 0xf9e   : > { %1817 = vmatmul.bf16.vlgmr.msra.gmra.mxu2 %v1743_v28 }
0x1021   : > { %v1818_v30 = vpop.f32.mrf.mxu2 }
0x1022   : > { %v1822_v31 = vadd.f32 %v1818_v30, %v2848_v8  ;;  %v2245_v8 = vld [vmem:[%s2974_s14] sm:$0xff] }
0x1023   : > { %1890 = vmatpush.bf16.msrb.mxu0 %v2245_v8 }
0x1024   : > { %v1828_v0 = vadd.f32 %v2316_v29, %v1822_v31 }
0x1026   : > { %v1831_v32 = vsel %vm539_vm0, %v1828_v0, 0.0  ;;  %v1835_v33 = vmul.f32 %v1828_v0, %v1828_v0 }
0x1027   : > { %1832 = vadd.xlane.f32.xlu1 %v1831_v32 }
0x1028   : > { %v1836_v35 = vsel %vm539_vm0, %v1835_v33, 0.0 }
0x1029   : > { %1837 = vadd.xlane.f32.xlu2 %v1836_v35  ;;  %v1820_v36 = vpop.f32.mrf.mxu2 }
0x1041   : > { %1898 = vrot.lane.b32.xlu2 %v2775_v18, %s2446_s23  ;;  %s1909_s23 = scalar_lea.sflag [#allocation3], %s511_s28 }
0x109a   : > { %v1833_v39 = vpop.xlane.xlu1 %1832 }
0x109b   : > { %v1834_v41 = vmul.f32 %v1833_v39, %v2602_v13 }
0x109c   : > { %v1838_v42 = vpop.xlane.xlu2 %1837 }
0x109d   : > { %v1840_v43 = vmul.f32 %v1834_v41, %v1834_v41  ;;  %v1839_v44 = vmul.f32 %v1838_v42, %v2602_v13  ;;  %v1842_v27 = vsub.f32 %v1828_v0, %v1834_v41 }
0x109f   : > { %v1841_v46 = vsub.f32 %v1839_v44, %v1840_v43 }
0x10a1   : > { %v1843_v47 = vadd.f32 1e-05, %v1841_v46 }
0x10a3   : > { %2365 = vrsqrt.f32 %v1843_v47  ;;  %vm1850_vm8 = vweird.f32 %v1843_v47 }
0x10a4   : > { %v1899_v50 = vpop.permute.xlu2 %1898 }
0x10a5   : > { %v1905_v51 = vsel %vm1904_vm4, %v1903_v49, %v1899_v50 }
0x10a6   : > { %1906 = vst [vmem:[%s529_s27] sm:$0xff] %v1905_v51 }
0x10a9   : > { %v2366_v53 = vpop.eup %2365 }
0x10aa   : > { %v1845_v54 = vmul.f32 %v2366_v53, %v1843_v47  ;;  %vm1851_vm7 = vweird.f32 %v2366_v53 }
0x10ab   : > { %vm1852_vm9 = vmor %vm1850_vm8, %vm1851_vm7 }
0x10ac   : > { %v1846_v55 = vmul.f32 %v2366_v53, %v1845_v54 }
0x10ae   : > { %v1847_v56 = vmul.f32 0.5, %v1846_v55 }
0x10b0   : > { %v1848_v13 = vsub.f32 1.5, %v1847_v56 }
0x10b2   : > { %v1849_v57 = vmul.f32 %v2366_v53, %v1848_v13 }
0x10b4   : > { %v1853_v34 = vsel %vm1852_vm9, %v2366_v53, %v1849_v57 }
0x10b5   : > { %v1854_v18 = vmul.f32 %v1853_v34, %v1842_v27 }
0x10b7   : > { %v1858_v59 = vmul.f32 %v2317_v40, %v1854_v18 }
0x10b9   : > { %v1862_v61 = vadd.f32 %v2318_v58, %v1858_v59 }
0x10bb   : > { %v1863_v62 = vpack.c.bf16 %v1862_v61, %v1862_v61 }
0x10bd   : > { %2211 = vmatmul.msk.bf16.vlgmr.msrb.gmra.mxu0 %vm539_vm0, %v1863_v62 }
0x113a   : > { %v1892_v63 = vpop.f32.mrf.mxu0 }
0x113b   : > { %1896 = vst [vmem:[%s513_s1] sm:$0xff] %v1892_v63 }
0x113c   : > { %2394 = shalt.err (!%p2391_p3)
}
0x113d   : > { %2247 = dma.vmem_to_hbm [thread:$0]  (%p2571_p5), %s1927_s18, 128, %s1929_s2, %s1909_s23  }
0x1142   : > { %v1894_v1 = vpop.f32.mrf.mxu0 }
0x1143 PF: > { %p2253_p4 = scmp.ge.s32.totalorder %s2429_s24, 2  ;;  %s1943_s28 = sand.u32 1, %s2417_s21  }
0x1144   : > { %s1944_s4 = scalar_lea.sflag [#allocation3], %s1943_s28 }
0x1145   : > { %p2250_p7 = pnand %p2253_p4, %p2575_p6 }
0x1147   : > { %p2251_p8 = pneg %p2250_p7 }
0x1149   : > { %2412 = dma.done.wait (%p2251_p8), %s1944_s4, 128  }
0x114a   : > { %2414 = vsyncadd (%p2251_p8), %s1944_s4, 4294967168  ;;  %s3025_s24 = sld [smem:[#allocation6_spill]]  ;;  %s3028_s21 = smov %s2421_s22 }
0x114b   : > { %s3026_s3 = sld [smem:[#allocation5_spill]] }
0x114c   : > { %s3027_s23 = sld [smem:[#allocation7_spill]] }
0x1150   : > { %p27_p9 = scmp.ge.s32.totalorder %s3025_s24, 4  }
0x1151   : > { %s3029_s22 = smov %s3026_s3 }
0x1152   :  { %29 = sbr.rel (!%p27_p9) target bundleno = 9 (0x9), region = 138 }
0x1157   :  { %1958 = vsyncpa [#allocation3], 1 }
0x1158   :  { %1960 = vsyncpa [#allocation3 + $0x1], 1 }

</bundles_post_ra>
